<compile_context>
chip_gen: v5e
topology: v5e:2x2
jax: 0.10.0
libtpu: 0.0.40
codegen_flags: <defaults>
</compile_context>

<pallas_src>
import functools

import jax
import jax.numpy as jnp
from jax.experimental import pallas as pl
from jax.experimental.pallas import tpu as pltpu

K = 3           # GMMConv kernel_size
EPS = 1e-15     # matches torch_geometric GMMConv
C_PAD = 128     # lane-dense channel padding (max real width here is 32)


# ----------------------------------------------------------------------------
# Fused Pallas kernel: whole GMMNet_U forward, one grid step per GMMConv layer.
# ----------------------------------------------------------------------------
def _gmmnet_u_kernel(post_act_ref, skip_wr_ref, skip_rd_ref,       # scalar prefetch (SMEM)
                     x_ref, w_ref, a_ref, b_ref,                   # inputs
                     o_ref,                                        # output
                     x_state, h_scr, skips,                        # VMEM scratch
                     *, n_pad, c_pad, depth, approx_gelu):
    """Refs (per grid step l over layers):

    post_act_ref : [L]              i32 SMEM  1 -> wrapper-level active() after this conv
    skip_wr_ref  : [L]              i32 SMEM  encoder skip slot to write (-1 = none)
    skip_rd_ref  : [L]              i32 SMEM  decoder skip slot to add   (-1 = none)
    x_ref        : [Np, Cp]         f32       padded node features (read at l == 0)
    w_ref        : [1, Cp, 4*Cp]    bf16      this layer's [R | G_1 | G_2 | G_3]
    a_ref        : [1, Np, K*Np]    bf16      this layer's [A_1 | A_2 | A_3] (mean folded in)
    b_ref        : [1, 1, Cp]       f32       this layer's bias
    o_ref        : [Np, Cp]         f32       padded output (written at last layer)
    x_state      : [Np, Cp]         f32       resident node features
    h_scr        : [K*Np, Cp]       bf16      stacked neighbor-transform outputs
    skips        : [depth, Np, Cp]  f32       encoder skip stash
    """
    l = pl.program_id(0)
    n_layers = pl.num_programs(0)

    @pl.when(l == 0)
    def _():
        x_state[...] = x_ref[...]
        skips[...] = jnp.zeros_like(skips)

    def act(v):
        return jax.nn.gelu(v, approximate=approx_gelu)

    # --- fused GMMConv:  y = GELU( sum_k A_k @ (x @ G_k) + x @ R + b ) ------------------
    xb = x_state[...].astype(w_ref.dtype)
    fused = jnp.dot(xb, w_ref[0], preferred_element_type=jnp.float32)   # [Np, (1+K)*Cp]
    root = fused[:, :c_pad]
    for k in range(K):  # stack h_k along rows -> one deep-contraction aggregation dot
        h_scr[k * n_pad:(k + 1) * n_pad, :] = (
            fused[:, (k + 1) * c_pad:(k + 2) * c_pad].astype(h_scr.dtype))
    agg = jnp.dot(a_ref[0], h_scr[...], preferred_element_type=jnp.float32)  # [Np, Cp]
    y = act(agg + root + b_ref[0])          # GMMResBlock-internal activation

    # --- decoder skip-add (before wrapper-level activation) ------------------------------
    rd = skip_rd_ref[l]
    for s in range(depth):
        y = jnp.where(rd == s, y + skips[s], y)

    # --- wrapper-level active() (encoder conv1 / bottleneck conv1 / decoder convs) -------
    y = jnp.where(post_act_ref[l] == 1, act(y), y)

    x_state[...] = y

    # --- encoder skip stash ---------------------------------------------------------------
    wr = skip_wr_ref[l]
    for s in range(depth):
        @pl.when(wr == s)
        def _(s=s):
            skips[s] = y

    @pl.when(l == n_layers - 1)
    def _():
        o_ref[...] = y


@functools.partial(jax.jit,
                   static_argnames=("depth", "approx_gelu", "out_dim", "n_pad", "c_pad"))
def _forward_jit(x, W, A, B, post_act, skip_wr, skip_rd, *,
                 depth, approx_gelu, out_dim, n_pad, c_pad):
    n, cin = x.shape
    xp = jnp.zeros((n_pad, c_pad), jnp.float32).at[:n, :cin].set(x.astype(jnp.float32))
    n_layers = W.shape[0]

    kernel = functools.partial(_gmmnet_u_kernel, n_pad=n_pad, c_pad=c_pad,
                               depth=depth, approx_gelu=approx_gelu)

    # VMEM budget: double-buffered per-layer streamed blocks + resident state + headroom.
    mxu_bytes = jnp.dtype(W.dtype).itemsize
    per_layer_stream = (c_pad * (1 + K) * c_pad * mxu_bytes          # W_cat block
                        + n_pad * K * n_pad * mxu_bytes              # A_cat block
                        + c_pad * 4)                                 # bias block
    resident = ((3 + depth) * n_pad * c_pad * 4                      # x in, out, state, skips
                + K * n_pad * c_pad * mxu_bytes)                     # h scratch
    vmem_limit = int(min(max(2 * per_layer_stream + resident + (4 << 20), 16 << 20),
                         64 << 20))

    grid_spec = pltpu.PrefetchScalarGridSpec(
        num_scalar_prefetch=3,
        grid=(n_layers,),
        in_specs=[
            pl.BlockSpec((n_pad, c_pad), lambda l, *_: (0, 0)),                  # x (resident)
            pl.BlockSpec((1, c_pad, (1 + K) * c_pad), lambda l, *_: (l, 0, 0)),  # W (streamed)
            pl.BlockSpec((1, n_pad, K * n_pad), lambda l, *_: (l, 0, 0)),        # A (streamed)
            pl.BlockSpec((1, 1, c_pad), lambda l, *_: (l, 0, 0)),                # b (streamed)
        ],
        out_specs=pl.BlockSpec((n_pad, c_pad), lambda l, *_: (0, 0)),
        scratch_shapes=[
            pltpu.VMEM((n_pad, c_pad), jnp.float32),            # resident node state
            pltpu.VMEM((K * n_pad, c_pad), W.dtype),            # stacked neighbor transforms
            pltpu.VMEM((depth, n_pad, c_pad), jnp.float32),     # encoder skip stash
        ],
    )

    out = pl.pallas_call(
        kernel,
        grid_spec=grid_spec,
        out_shape=jax.ShapeDtypeStruct((n_pad, c_pad), jnp.float32),
        compiler_params=pltpu.CompilerParams(
            dimension_semantics=("arbitrary",),
            vmem_limit_bytes=vmem_limit),
    )(post_act, skip_wr, skip_rd, xp, W, A, B)
    return out[:n, :out_dim]


def gmmnet_u_forward(prep, x, out_dim):
    return _forward_jit(x, prep["W"], prep["A"], prep["B"],
                        prep["post_act"], prep["skip_wr"], prep["skip_rd"],
                        depth=prep["depth"], approx_gelu=prep["approx_gelu"],
                        out_dim=out_dim, n_pad=prep["n_pad"], c_pad=prep["c_pad"])


# ----------------------------------------------------------------------------
# Parameter init (deterministic, synthetic) — same structure as the torch module
# ----------------------------------------------------------------------------
def init_gmm_conv(key, cin, cout):
    k1, k2, k3, k4 = jax.random.split(key, 4)
    scale = 1.0 / jnp.sqrt(jnp.float32(cin))
    g = jax.random.normal(k1, (cin, K * cout), jnp.float32) * scale      # x_j transforms
    root = jax.random.normal(k2, (cin, cout), jnp.float32) * scale       # root weight
    bias = jnp.zeros((1, cout), jnp.float32)
    mu = jax.random.normal(k3, (1, K), jnp.float32)                      # [1, K] (dim=1)
    sigma = 1.0 + 0.1 * jax.random.normal(k4, (1, K), jnp.float32)       # [1, K]
    return (g, root, bias, mu, sigma)


def init_res_block(key, cin, cout, basic_block):
    k1, k2 = jax.random.split(key)
    blk = {"conv": init_gmm_conv(k1, cin, cout), "basic": basic_block}
    if basic_block:
        blk["conv1"] = init_gmm_conv(k2, cout, cout)
    return blk


def init_gmmnet_u(key, in_dim, out_dim, width=8, depth=2):
    keys = jax.random.split(key, 2 * depth + 2)
    layers = []
    for i in range(depth):                     # encoders (basic_block=True)
        cin = in_dim if i == 0 else 2 ** (i - 1) * width
        cout = 2 ** i * width
        layers.append(init_res_block(keys[i], cin, cout, True))
    layers.append(init_res_block(keys[depth],  # bottleneck (basic_block=True)
                                 2 ** (depth - 1) * width, 2 ** depth * width, True))
    for j, i in enumerate(range(depth, 0, -1)):  # decoders (basic_block=False)
        layers.append(init_res_block(keys[depth + 1 + j],
                                     2 ** i * width, 2 ** (i - 1) * width, False))
    layers.append(init_res_block(keys[-1], width, out_dim, False))  # final conv1 block
    assert 2 ** depth * width <= C_PAD, "channel padding too small"
    return {"layers": layers, "depth": depth}


# ----------------------------------------------------------------------------
# One-time preprocessing: fold edges + (mu, sigma) into weighted adjacency, pack
# per-layer [R | G_k] and [A_k] into lane-dense concatenated bf16 tensors.
# ----------------------------------------------------------------------------
def _round_up(v, m):
    return ((v + m - 1) // m) * m


def _build_weighted_adjacency(edge_src, edge_dst, edge_attr, mu, sigma, n_pad):
    """A_k[n, m] = (1/deg(n)) * sum_{e: dst=n, src=m} w_k(e); mean aggregation folded in."""
    mu = mu.reshape(-1)
    sigma = sigma.reshape(-1)
    ea = edge_attr.reshape(-1).astype(jnp.float32)
    diff = ea[:, None] - mu[None, :]
    w = jnp.exp(-0.5 * diff * diff / (EPS + sigma[None, :] ** 2))        # [E, K]
    nodes = jnp.arange(n_pad, dtype=jnp.int32)
    dst_oh = (edge_dst.reshape(-1)[:, None] == nodes[None, :]).astype(jnp.float32)  # [E, Np]
    src_oh = (edge_src.reshape(-1)[:, None] == nodes[None, :]).astype(jnp.float32)  # [E, Np]
    inv_deg = 1.0 / jnp.maximum(dst_oh.sum(axis=0), 1.0)                 # [Np]
    a = jnp.einsum("en,ek,em->knm", dst_oh, w, src_oh)                   # [K, Np, Np]
    return a * inv_deg[None, :, None]


def _pack_conv(conv_params, edge_src, edge_dst, edge_attr, n_pad, c_pad):
    g, root, bias, mu, sigma = conv_params
    cin, kcout = g.shape
    cout = kcout // K
    # W_cat = [R | G_1 | G_2 | G_3]  -> one fused x @ W_cat per layer
    w = jnp.zeros((c_pad, (1 + K) * c_pad), jnp.float32)
    w = w.at[:cin, :cout].set(root)
    for k in range(K):
        w = w.at[:cin, (k + 1) * c_pad:(k + 1) * c_pad + cout].set(
            g[:, k * cout:(k + 1) * cout])
    bp = jnp.zeros((1, c_pad), jnp.float32).at[:, :cout].set(bias.reshape(1, -1))
    a = _build_weighted_adjacency(edge_src, edge_dst, edge_attr, mu, sigma, n_pad)
    a_cat = jnp.concatenate([a[k] for k in range(K)], axis=1)            # [Np, K*Np]
    return w, a_cat, bp


def prepare_network(params, edge_src, edge_dst, edge_attr, n,
                    c_pad=C_PAD, use_bf16=True, approx_gelu=True):
    depth = params["depth"]
    n_pad = _round_up(max(n, 128), 128)          # lane-aligned node count (A's lane/contraction dim)

    conv_list = []
    for blk in params["layers"]:
        conv_list.append(blk["conv"])
        if blk["basic"]:
            conv_list.append(blk["conv1"])

    # Per-conv schedule flags, matching the torch forward's layer loop:
    #   encoders: conv, conv1(+wrapper act, stash skip i)
    #   bottleneck: conv, conv1(+wrapper act)
    #   decoders: conv(+skip add depth-1-j, wrapper act)
    #   final: conv only
    post_act, skip_wr, skip_rd = [], [], []
    for i in range(depth):
        post_act += [0, 1]; skip_wr += [-1, i]; skip_rd += [-1, -1]
    post_act += [0, 1]; skip_wr += [-1, -1]; skip_rd += [-1, -1]
    for j in range(depth):
        post_act += [1]; skip_wr += [-1]; skip_rd += [depth - 1 - j]
    post_act += [0]; skip_wr += [-1]; skip_rd += [-1]
    assert len(post_act) == len(conv_list)

    packed = [_pack_conv(c, edge_src, edge_dst, edge_attr, n_pad, c_pad) for c in conv_list]
    mxu_dtype = jnp.bfloat16 if use_bf16 else jnp.float32
    W = jnp.stack([p[0] for p in packed]).astype(mxu_dtype)   # [L, Cp, (1+K)*Cp]
    A = jnp.stack([p[1] for p in packed]).astype(mxu_dtype)   # [L, Np, K*Np]
    B = jnp.stack([p[2] for p in packed])                     # [L, 1, Cp] f32
    return {"W": W, "A": A, "B": B,
            "post_act": jnp.asarray(post_act, jnp.int32),
            "skip_wr": jnp.asarray(skip_wr, jnp.int32),
            "skip_rd": jnp.asarray(skip_rd, jnp.int32),
            "depth": depth, "n_pad": n_pad, "c_pad": c_pad,
            "approx_gelu": approx_gelu}


# ----------------------------------------------------------------------------
if __name__ == "__main__":
    key = jax.random.PRNGKey(0)
    k_x, k_params = jax.random.split(key)

    # Small deterministic graph: ring of N nodes, each connected to +/-1, +/-2.
    N = 32
    in_dim, out_dim, width, depth = 4, 4, 8, 2
    offsets = (-2, -1, 1, 2)
    src_list, dst_list, attr_list = [], [], []
    for i in range(N):
        for o in offsets:
            src_list.append((i + o) % N)
            dst_list.append(i)
            attr_list.append(abs(o) / N)             # 1-D pseudo-coordinate
    edge_src = jnp.asarray(src_list, jnp.int32)      # [E]
    edge_dst = jnp.asarray(dst_list, jnp.int32)      # [E]
    edge_attr = jnp.asarray(attr_list, jnp.float32)  # [E]

    x = jax.random.normal(k_x, (N, in_dim), jnp.float32)      # node features [N, C]

    params = init_gmmnet_u(k_params, in_dim, out_dim, width=width, depth=depth)
    prep = prepare_network(params, edge_src, edge_dst, edge_attr, n=N)

    y = gmmnet_u_forward(prep, x, out_dim=out_dim)
    y = jax.block_until_ready(y)
    assert y.shape == (N, out_dim), y.shape
    assert bool(jnp.all(jnp.isfinite(y)))
    print("KERNEL_OK")
</pallas_src>

<mosaic_0001>
module attributes {stable_mosaic.version = 11 : i64} {
  func.func @_gmmnet_u_kernel(%arg0: i32, %arg1: memref<9xi32, #tpu.memory_space<smem>>, %arg2: memref<9xi32, #tpu.memory_space<smem>>, %arg3: memref<9xi32, #tpu.memory_space<smem>>, %arg4: memref<128x128xf32, #tpu.memory_space<vmem>>, %arg5: memref<1x128x512xbf16, #tpu.memory_space<vmem>>, %arg6: memref<1x128x384xbf16, #tpu.memory_space<vmem>>, %arg7: memref<1x1x128xf32, #tpu.memory_space<vmem>>, %arg8: memref<128x128xf32, #tpu.memory_space<vmem>>, %arg9: memref<128x128xf32, #tpu.memory_space<vmem>>, %arg10: memref<384x128xbf16, #tpu.memory_space<vmem>>, %arg11: memref<2x128x128xf32, #tpu.memory_space<vmem>>) attributes {dimension_semantics = [#tpu.dimension_semantics<arbitrary>], iteration_bounds = array<i64: 9>, scalar_prefetch = 3 : i64, scratch_operands = 3 : i64, tpu.core_type = #tpu.core_type<tc>, window_params = [{pipeline_mode = #tpu.pipeline_mode<synchronous>, transform_indices = @transform_0, window_bounds = array<i64: 128, 128>}, {transform_indices = @transform_1, window_bounds = array<i64: 1, 128, 512>}, {transform_indices = @transform_2, window_bounds = array<i64: 1, 128, 384>}, {transform_indices = @transform_3, window_bounds = array<i64: 1, 1, 128>}, {pipeline_mode = #tpu.pipeline_mode<synchronous>, transform_indices = @transform_4, window_bounds = array<i64: 128, 128>}]} {
    %c0_i32 = arith.constant 0 : i32
    %0 = arith.cmpi eq, %arg0, %c0_i32 : i32
    %1 = arith.extui %0 : i1 to i32
    %c0_i32_0 = arith.constant 0 : i32
    %2 = arith.cmpi ne, %1, %c0_i32_0 : i32
    scf.if %2 {
      %c0_40 = arith.constant 0 : index
      %c0_41 = arith.constant 0 : index
      %81 = vector.load %arg4[%c0_40, %c0_41] : memref<128x128xf32, #tpu.memory_space<vmem>>, vector<128x128xf32>
      %c0_42 = arith.constant 0 : index
      %c0_43 = arith.constant 0 : index
      %82 = vector.load %arg9[%c0_42, %c0_43] : memref<128x128xf32, #tpu.memory_space<vmem>>, vector<128x128xf32>
      tpu.vector_store %arg9[%c0_42, %c0_43], %81 {strides = array<i32>} : memref<128x128xf32, #tpu.memory_space<vmem>>, vector<128x128xf32>,
      %cst_44 = arith.constant 0.000000e+00 : f32
      %83 = vector.broadcast %cst_44 : f32 to vector<2x128x128xf32>
      %c0_45 = arith.constant 0 : index
      %c0_46 = arith.constant 0 : index
      %c0_47 = arith.constant 0 : index
      %84 = vector.load %arg11[%c0_45, %c0_46, %c0_47] : memref<2x128x128xf32, #tpu.memory_space<vmem>>, vector<2x128x128xf32>
      tpu.vector_store %arg11[%c0_45, %c0_46, %c0_47], %83 {strides = array<i32>} : memref<2x128x128xf32, #tpu.memory_space<vmem>>, vector<2x128x128xf32>,
    } else {
    }
    %c0 = arith.constant 0 : index
    %c0_1 = arith.constant 0 : index
    %3 = vector.load %arg9[%c0, %c0_1] : memref<128x128xf32, #tpu.memory_space<vmem>>, vector<128x128xf32>
    %4 = arith.truncf %3 : vector<128x128xf32> to vector<128x128xbf16>
    %c0_2 = arith.constant 0 : index
    %c0_3 = arith.constant 0 : index
    %c0_4 = arith.constant 0 : index
    %5 = vector.load %arg5[%c0_2, %c0_3, %c0_4] : memref<1x128x512xbf16, #tpu.memory_space<vmem>>, vector<1x128x512xbf16>
    %6 = vector.shape_cast %5 : vector<1x128x512xbf16> to vector<128x512xbf16>
    %cst = arith.constant dense<0.000000e+00> : vector<128x512xf32>
    %7 = tpu.matmul %4, %6, %cst {dimension_numbers = #tpu.dot_dimension_numbers<[1], [0], [0], [1], [0, 0, 1, 1], [], []>} : vector<128x128xbf16>, vector<128x512xbf16>, vector<128x512xf32> -> vector<128x512xf32>
    %8 = vector.extract_strided_slice %7 {offsets = [0, 0], sizes = [128, 128], strides = [1, 1]} : vector<128x512xf32> to vector<128x128xf32>
    %9 = vector.extract_strided_slice %7 {offsets = [0, 128], sizes = [128, 128], strides = [1, 1]} : vector<128x512xf32> to vector<128x128xf32>
    %10 = arith.truncf %9 : vector<128x128xf32> to vector<128x128xbf16>
    %c0_5 = arith.constant 0 : index
    %c0_6 = arith.constant 0 : index
    %11 = vector.load %arg10[%c0_5, %c0_6] : memref<384x128xbf16, #tpu.memory_space<vmem>>, vector<128x128xbf16>
    tpu.vector_store %arg10[%c0_5, %c0_6], %10 {strides = array<i32>} : memref<384x128xbf16, #tpu.memory_space<vmem>>, vector<128x128xbf16>,
    %12 = vector.extract_strided_slice %7 {offsets = [0, 256], sizes = [128, 128], strides = [1, 1]} : vector<128x512xf32> to vector<128x128xf32>
    %13 = arith.truncf %12 : vector<128x128xf32> to vector<128x128xbf16>
    %c128 = arith.constant 128 : index
    %c0_7 = arith.constant 0 : index
    %14 = vector.load %arg10[%c128, %c0_7] : memref<384x128xbf16, #tpu.memory_space<vmem>>, vector<128x128xbf16>
    tpu.vector_store %arg10[%c128, %c0_7], %13 {strides = array<i32>} : memref<384x128xbf16, #tpu.memory_space<vmem>>, vector<128x128xbf16>,
    %15 = vector.extract_strided_slice %7 {offsets = [0, 384], sizes = [128, 128], strides = [1, 1]} : vector<128x512xf32> to vector<128x128xf32>
    %16 = arith.truncf %15 : vector<128x128xf32> to vector<128x128xbf16>
    %c256 = arith.constant 256 : index
    %c0_8 = arith.constant 0 : index
    %17 = vector.load %arg10[%c256, %c0_8] : memref<384x128xbf16, #tpu.memory_space<vmem>>, vector<128x128xbf16>
    tpu.vector_store %arg10[%c256, %c0_8], %16 {strides = array<i32>} : memref<384x128xbf16, #tpu.memory_space<vmem>>, vector<128x128xbf16>,
    %c0_9 = arith.constant 0 : index
    %c0_10 = arith.constant 0 : index
    %c0_11 = arith.constant 0 : index
    %18 = vector.load %arg6[%c0_9, %c0_10, %c0_11] : memref<1x128x384xbf16, #tpu.memory_space<vmem>>, vector<1x128x384xbf16>
    %19 = vector.shape_cast %18 : vector<1x128x384xbf16> to vector<128x384xbf16>
    %c0_12 = arith.constant 0 : index
    %c0_13 = arith.constant 0 : index
    %20 = vector.load %arg10[%c0_12, %c0_13] : memref<384x128xbf16, #tpu.memory_space<vmem>>, vector<384x128xbf16>
    %cst_14 = arith.constant dense<0.000000e+00> : vector<128x128xf32>
    %21 = tpu.matmul %19, %20, %cst_14 {dimension_numbers = #tpu.dot_dimension_numbers<[1], [0], [0], [1], [0, 0, 1, 1], [], []>} : vector<128x384xbf16>, vector<384x128xbf16>, vector<128x128xf32> -> vector<128x128xf32>
    %22 = arith.addf %21, %8 : vector<128x128xf32>
    %c0_15 = arith.constant 0 : index
    %c0_16 = arith.constant 0 : index
    %c0_17 = arith.constant 0 : index
    %23 = vector.load %arg7[%c0_15, %c0_16, %c0_17] : memref<1x1x128xf32, #tpu.memory_space<vmem>>, vector<1x1x128xf32>
    %24 = vector.shape_cast %23 : vector<1x1x128xf32> to vector<1x128xf32>
    %25 = vector.broadcast %24 : vector<1x128xf32> to vector<128x128xf32>
    %26 = arith.addf %22, %25 : vector<128x128xf32>
    %27 = arith.mulf %26, %26 : vector<128x128xf32>
    %28 = arith.mulf %26, %27 : vector<128x128xf32>
    %cst_18 = arith.constant 4.471500e-02 : f32
    %29 = vector.broadcast %cst_18 : f32 to vector<128x128xf32>
    %30 = arith.mulf %29, %28 : vector<128x128xf32>
    %31 = arith.addf %26, %30 : vector<128x128xf32>
    %cst_19 = arith.constant 0.797884583 : f32
    %32 = vector.broadcast %cst_19 : f32 to vector<128x128xf32>
    %33 = arith.mulf %32, %31 : vector<128x128xf32>
    %34 = math.tanh %33 : vector<128x128xf32>
    %cst_20 = arith.constant 1.000000e+00 : f32
    %35 = vector.broadcast %cst_20 : f32 to vector<128x128xf32>
    %36 = arith.addf %35, %34 : vector<128x128xf32>
    %cst_21 = arith.constant 5.000000e-01 : f32
    %37 = vector.broadcast %cst_21 : f32 to vector<128x128xf32>
    %38 = arith.mulf %37, %36 : vector<128x128xf32>
    %39 = arith.mulf %26, %38 : vector<128x128xf32>
    %40 = arith.index_cast %arg0 : i32 to index
    %41 = memref.load %arg3[%40] : memref<9xi32, #tpu.memory_space<smem>>
    %c0_i32_22 = arith.constant 0 : i32
    %42 = arith.cmpi eq, %41, %c0_i32_22 : i32
    %c0_23 = arith.constant 0 : index
    %c0_24 = arith.constant 0 : index
    %c0_25 = arith.constant 0 : index
    %43 = vector.load %arg11[%c0_23, %c0_24, %c0_25] : memref<2x128x128xf32, #tpu.memory_space<vmem>>, vector<1x128x128xf32>
    %44 = vector.shape_cast %43 : vector<1x128x128xf32> to vector<128x128xf32>
    %45 = arith.addf %39, %44 : vector<128x128xf32>
    %46 = arith.select %42, %45, %39 : vector<128x128xf32>
    %c1_i32 = arith.constant 1 : i32
    %47 = arith.cmpi eq, %41, %c1_i32 : i32
    %c1 = arith.constant 1 : index
    %c0_26 = arith.constant 0 : index
    %c0_27 = arith.constant 0 : index
    %48 = vector.load %arg11[%c1, %c0_26, %c0_27] : memref<2x128x128xf32, #tpu.memory_space<vmem>>, vector<1x128x128xf32>
    %49 = vector.shape_cast %48 : vector<1x128x128xf32> to vector<128x128xf32>
    %50 = arith.addf %46, %49 : vector<128x128xf32>
    %51 = arith.select %47, %50, %46 : vector<128x128xf32>
    %52 = arith.index_cast %arg0 : i32 to index
    %53 = memref.load %arg1[%52] : memref<9xi32, #tpu.memory_space<smem>>
    %c1_i32_28 = arith.constant 1 : i32
    %54 = arith.cmpi eq, %53, %c1_i32_28 : i32
    %55 = arith.mulf %51, %51 : vector<128x128xf32>
    %56 = arith.mulf %51, %55 : vector<128x128xf32>
    %cst_29 = arith.constant 4.471500e-02 : f32
    %57 = vector.broadcast %cst_29 : f32 to vector<128x128xf32>
    %58 = arith.mulf %57, %56 : vector<128x128xf32>
    %59 = arith.addf %51, %58 : vector<128x128xf32>
    %cst_30 = arith.constant 0.797884583 : f32
    %60 = vector.broadcast %cst_30 : f32 to vector<128x128xf32>
    %61 = arith.mulf %60, %59 : vector<128x128xf32>
    %62 = math.tanh %61 : vector<128x128xf32>
    %cst_31 = arith.constant 1.000000e+00 : f32
    %63 = vector.broadcast %cst_31 : f32 to vector<128x128xf32>
    %64 = arith.addf %63, %62 : vector<128x128xf32>
    %cst_32 = arith.constant 5.000000e-01 : f32
    %65 = vector.broadcast %cst_32 : f32 to vector<128x128xf32>
    %66 = arith.mulf %65, %64 : vector<128x128xf32>
    %67 = arith.mulf %51, %66 : vector<128x128xf32>
    %68 = arith.select %54, %67, %51 : vector<128x128xf32>
    %c0_33 = arith.constant 0 : index
    %c0_34 = arith.constant 0 : index
    %69 = vector.load %arg9[%c0_33, %c0_34] : memref<128x128xf32, #tpu.memory_space<vmem>>, vector<128x128xf32>
    tpu.vector_store %arg9[%c0_33, %c0_34], %68 {strides = array<i32>} : memref<128x128xf32, #tpu.memory_space<vmem>>, vector<128x128xf32>,
    %70 = arith.index_cast %arg0 : i32 to index
    %71 = memref.load %arg2[%70] : memref<9xi32, #tpu.memory_space<smem>>
    %c0_i32_35 = arith.constant 0 : i32
    %72 = arith.cmpi eq, %71, %c0_i32_35 : i32
    %73 = arith.extui %72 : i1 to i32
    %c0_i32_36 = arith.constant 0 : i32
    %74 = arith.cmpi ne, %73, %c0_i32_36 : i32
    scf.if %74 {
      %c0_40 = arith.constant 0 : index
      %c0_41 = arith.constant 0 : index
      %c0_42 = arith.constant 0 : index
      %81 = vector.load %arg11[%c0_40, %c0_41, %c0_42] : memref<2x128x128xf32, #tpu.memory_space<vmem>>, vector<1x128x128xf32>
      %82 = vector.shape_cast %81 : vector<1x128x128xf32> to vector<128x128xf32>
      %83 = vector.shape_cast %68 : vector<128x128xf32> to vector<1x128x128xf32>
      tpu.vector_store %arg11[%c0_40, %c0_41, %c0_42], %83 {strides = array<i32>} : memref<2x128x128xf32, #tpu.memory_space<vmem>>, vector<1x128x128xf32>,
    } else {
    }
    %c1_i32_37 = arith.constant 1 : i32
    %75 = arith.cmpi eq, %71, %c1_i32_37 : i32
    %76 = arith.extui %75 : i1 to i32
    %c0_i32_38 = arith.constant 0 : i32
    %77 = arith.cmpi ne, %76, %c0_i32_38 : i32
    scf.if %77 {
      %c1_40 = arith.constant 1 : index
      %c0_41 = arith.constant 0 : index
      %c0_42 = arith.constant 0 : index
      %81 = vector.load %arg11[%c1_40, %c0_41, %c0_42] : memref<2x128x128xf32, #tpu.memory_space<vmem>>, vector<1x128x128xf32>
      %82 = vector.shape_cast %81 : vector<1x128x128xf32> to vector<128x128xf32>
      %83 = vector.shape_cast %68 : vector<128x128xf32> to vector<1x128x128xf32>
      tpu.vector_store %arg11[%c1_40, %c0_41, %c0_42], %83 {strides = array<i32>} : memref<2x128x128xf32, #tpu.memory_space<vmem>>, vector<1x128x128xf32>,
    } else {
    }
    %c8_i32 = arith.constant 8 : i32
    %78 = arith.cmpi eq, %arg0, %c8_i32 : i32
    %79 = arith.extui %78 : i1 to i32
    %c0_i32_39 = arith.constant 0 : i32
    %80 = arith.cmpi ne, %79, %c0_i32_39 : i32
    scf.if %80 {
      %c0_40 = arith.constant 0 : index
      %c0_41 = arith.constant 0 : index
      %81 = vector.load %arg8[%c0_40, %c0_41] : memref<128x128xf32, #tpu.memory_space<vmem>>, vector<128x128xf32>
      tpu.vector_store %arg8[%c0_40, %c0_41], %68 {strides = array<i32>} : memref<128x128xf32, #tpu.memory_space<vmem>>, vector<128x128xf32>,
    } else {
    }
    return
  }
  func.func @transform_0(%arg0: i32, %arg1: memref<9xi32, #tpu.memory_space<smem>>, %arg2: memref<9xi32, #tpu.memory_space<smem>>, %arg3: memref<9xi32, #tpu.memory_space<smem>>) -> (i32, i32) {
    %c0_i32 = arith.constant 0 : i32
    %c0_i32_0 = arith.constant 0 : i32
    %c0_i32_1 = arith.constant 0 : i32
    return %c0_i32, %c0_i32_0 : i32, i32
  }
  func.func @transform_1(%arg0: i32, %arg1: memref<9xi32, #tpu.memory_space<smem>>, %arg2: memref<9xi32, #tpu.memory_space<smem>>, %arg3: memref<9xi32, #tpu.memory_space<smem>>) -> (i32, i32, i32) {
    %c0_i32 = arith.constant 0 : i32
    %c0_i32_0 = arith.constant 0 : i32
    %c0_i32_1 = arith.constant 0 : i32
    return %arg0, %c0_i32, %c0_i32_0 : i32, i32, i32
  }
  func.func @transform_2(%arg0: i32, %arg1: memref<9xi32, #tpu.memory_space<smem>>, %arg2: memref<9xi32, #tpu.memory_space<smem>>, %arg3: memref<9xi32, #tpu.memory_space<smem>>) -> (i32, i32, i32) {
    %c0_i32 = arith.constant 0 : i32
    %c0_i32_0 = arith.constant 0 : i32
    %c0_i32_1 = arith.constant 0 : i32
    return %arg0, %c0_i32, %c0_i32_0 : i32, i32, i32
  }
  func.func @transform_3(%arg0: i32, %arg1: memref<9xi32, #tpu.memory_space<smem>>, %arg2: memref<9xi32, #tpu.memory_space<smem>>, %arg3: memref<9xi32, #tpu.memory_space<smem>>) -> (i32, i32, i32) {
    %c0_i32 = arith.constant 0 : i32
    %c0_i32_0 = arith.constant 0 : i32
    %c0_i32_1 = arith.constant 0 : i32
    return %arg0, %c0_i32, %c0_i32_0 : i32, i32, i32
  }
  func.func @transform_4(%arg0: i32, %arg1: memref<9xi32, #tpu.memory_space<smem>>, %arg2: memref<9xi32, #tpu.memory_space<smem>>, %arg3: memref<9xi32, #tpu.memory_space<smem>>) -> (i32, i32) {
    %c0_i32 = arith.constant 0 : i32
    %c0_i32_0 = arith.constant 0 : i32
    %c0_i32_1 = arith.constant 0 : i32
    return %c0_i32, %c0_i32_0 : i32, i32
  }
}

</mosaic_0001>

<bundles_post_ra>
// kernel: _forward_jit.1
= control target key start
LH: loop header
LB: loop body
LE: loop exit
PB: predicated region body
PF: predicated region fallthrough
CT: control target
= control target key end

     0   :  { %s2841_s30 = smov [#allocation6]   ;;  %s2842_s8 = smov [#allocation7]   ;;  %s3859_s0 = inlined_call_operand.hbm [shape: s32[9], index: 0, kind: input, shape index: {}]   ;;  %s3860_s3 = inlined_call_operand.vmem [shape: f32[128,128], index: 3, kind: input, shape index: {}]   ;;  %s3861_s4 = inlined_call_operand.hbm [shape: bf16[9,128,512], index: 4, kind: input, shape index: {}]   ;;  %s3862_s5 = inlined_call_operand.hbm [shape: bf16[9,128,384], index: 5, kind: input, shape index: {}]   ;;  %s3863_s6 = inlined_call_operand.hbm [shape: f32[9,1,128], index: 6, kind: input, shape index: {}]   ;;  %s3864_s7 = inlined_call_operand.vmem [shape: f32[128,128], index: 7, kind: output, shape index: {}]   ;;  %s3865_s1 = inlined_call_operand.hbm [shape: s32[9], index: 1, kind: input, shape index: {}]   ;;  %s3866_s2 = inlined_call_operand.hbm [shape: s32[9], index: 2, kind: input, shape index: {}]  }
   0x1   :  { %s13_s26 = sshll.u32 %s3859_s0, 4  ;;  %s18_s29 = sshll.u32 %s3865_s1, 4  ;;  %s14_s26 = int_to_ptr.hbm [resolvable:$true] %s13_s26  ;;  %s19_s29 = int_to_ptr.hbm [resolvable:$true] %s18_s29 }
   0x2   :  { %16 = dma.hbm_to_smem %s14_s26, 16, %s2841_s30, [#allocation5] }
   0x3   :  { %21 = dma.hbm_to_smem %s19_s29, 16, %s2842_s8, [#allocation5] }
   0x4   :  { %s23_s11 = sshll.u32 %s3866_s2, 4  ;;  %s2843_s12 = smov [#allocation8]   ;;  %s24_s11 = int_to_ptr.hbm [resolvable:$true] %s23_s11 }
   0x5   :  { %26 = dma.hbm_to_smem %s24_s11, 16, %s2843_s12, [#allocation5] }
   0x6   :  { %2815 = dma.done.wait [#allocation5], 48 }
   0x7   :  { %2816 = vsyncadd [#allocation5], 4294967248 }
   0x8   :  { %29 = sfence }
   0x9   :  { %30 = vsyncpa [#allocation10], 0 }
   0xa   :  { %32 = vsyncpa [#allocation10 + $0x1], 0 }
   0xb   :  { %33 = vsyncpa [#allocation12], 0 }
   0xc   :  { %35 = vsyncpa [#allocation12 + $0x1], 0  ;;  %s2898_s0 = smov 0   ;;  %s2900_s1 = smov 0  }
   0xd   :  { %s2902_s13 = smov 0   ;;  %s2904_s14 = smov 0  }
   0xe LB: > { %s2917_s2 = sadd.s32 4294967295, %s2839_s14   ;;  %s2920_s15 = sadd.s32 1, %s2839_s14   ;;  %s2839_s14 = sphi %s2904_s14, %s3879_s14   ;;  %s2835_s13 = sphi %s2902_s13, %s3878_s13   ;;  %s2831_s1 = sphi %s2900_s1, %s3877_s1   ;;  %s2827_s0 = sphi %s2898_s0, %s3876_s0  }
   0xf   : > { %s66_s16 = ssub.s32 %s2839_s14, %s2920_s15  ;;  %s69_s17 = sadd.s32 1, %s2835_s13 }
  0x10   : > { %p67_p0 = scmp.eq.s32.totalorder %s66_s16, 0  ;;  %p76_p1 = scmp.ne.s32.totalorder %s2835_s13, %s2831_s1 }
  0x11   : > { %p77_p2 = scmp.eq.s32.totalorder %s2839_s14, 0  ;;  %p82_p3 = scmp.ne.s32.totalorder %s2831_s1, %s2827_s0 }
  0x12   : > { %s2930_s18 = scalar_select %p67_p0, %s2835_s13, %s69_s17  }
  0x13   : > { %p78_p4 = por %p77_p2, %p76_p1  ;;  %p83_p5 = scmp.eq.s32.totalorder %s2917_s2, 0 }
  0x14   : > { %p2567_p6 = scmp.lt.s32.totalorder %s2839_s14, 9  ;;  %s2939_s20 = sand.u32 1, %s2835_s13  }
  0x15   : > { %p2934_p7 = por %p83_p5, %p82_p3  ;;  %s204_s22 = sand.u32 1, %s2839_s14  }
  0x16   : > { %p2941_p8 = pnand %p2567_p6, %p78_p4  ;;  %s2548_s23 = smul.u32 192, %s2939_s20 }
  0x17   : > { %s2549_s24 = smul.u32 192, %s2839_s14  ;;  %s2951_s8 = scalar_lea.sflag [#allocation12], %s204_s22 }
  0x18   : > { %s208_s28 = scalar_lea.vmem [#allocation11], %s2548_s23  ;;  %p2713_p10 = pneg %p2941_p8 }
  0x19   : > { %s213_s27 = scalar_lea.hbm %s3862_s5, %s2549_s24  ;;  %s216_s29 = sshll.u32 %s208_s28, 4  ;;  %s217_s29 = int_to_ptr.vmem [resolvable:$true] %s216_s29 }
  0x1a   : > { %s214_s30 = sshll.u32 %s213_s27, 4  ;;  %s2716_s0 = scalar_lea.hbm %s3862_s5, 1728  ;;  %s215_s30 = int_to_ptr.hbm [resolvable:$true] %s214_s30 }
  0x1b   : > { %s2709_s9 = sshra.s32 %s215_s30, 4  ;;  %s2710_s9 = int_to_ptr.hbm [resolvable:$true] %s2709_s9 }
  0x1c   : > { %s2711_s10 = scalar_lea.hbm %s2710_s9, 192  ;;  %p2717_p13 = scmp.lt.s32.totalorder %s2710_s9, %s3862_s5 }
  0x1d   : > { %p2712_p9 = scmp.ne.s32.totalorder %s2710_s9, %s2711_s10  ;;  %p2718_p0 = scmp.lt.s32.totalorder %s2716_s0, %s2711_s10 }
  0x1f   : > { %p2714_p11 = pnand %p2713_p10, %p2712_p9  ;;  %p2719_p1 = por %p2718_p0, %p2717_p13 }
  0x21   : > { %p2715_p12 = pneg %p2714_p11 }
  0x23   : > { %p2720_p2 = pnand %p2719_p1, %p2715_p12 }
  0x25   : > { %2723 = shalt.err (!%p2720_p2)
}
  0x26   : > { %s2844_s22 = smov 192   ;;  %s2845_s23 = smov 12  }
  0x27   : > { %2563 = dma.hbm_to_vmem [thread:$0]  (!%p2941_p8), %s215_s30, 3072, %s217_s29, %s2951_s8, %s2844_s22, %s2844_s22, %s2845_s23  }
  0x28   : > { %p1972_p3 = scmp.ge.s32.totalorder %s2839_s14, 1  ;;  %p241_p4 = scmp.lt.s32.totalorder %s2839_s14, 10 }
  0x29   : > { %s1968_s24 = sshll.u32 %s2939_s20, 8  ;;  %s2300_s26 = sshll.u32 %s2839_s14, 8 }
  0x2a   : > { %p2970_p5 = pnand %p1972_p3, %p241_p4  ;;  %s186_s27 = scalar_lea.vmem [#allocation9], %s1968_s24 }
  0x2b   : > { %s194_s28 = sshll.u32 %s186_s27, 4  ;;  %s191_s11 = scalar_lea.hbm %s3861_s4, %s2300_s26  ;;  %s195_s28 = int_to_ptr.vmem [resolvable:$true] %s194_s28 }
  0x2c   : > { %s192_s12 = sshll.u32 %s191_s11, 4  ;;  %s183_s0 = scalar_lea.sflag [#allocation10], %s2939_s20  ;;  %s193_s12 = int_to_ptr.hbm [resolvable:$true] %s192_s12 }
  0x2d   : > { %s2739_s29 = sshra.s32 %s193_s12, 4  ;;  %s2746_s22 = scalar_lea.hbm %s3861_s4, 2304  ;;  %s2740_s29 = int_to_ptr.hbm [resolvable:$true] %s2739_s29 }
  0x2e   : > { %s2741_s30 = scalar_lea.hbm %s2740_s29, 256  ;;  %p2747_p12 = scmp.lt.s32.totalorder %s2740_s29, %s3861_s4 }
  0x2f   : > { %p2742_p6 = scmp.ne.s32.totalorder %s2740_s29, %s2741_s30  ;;  %p2748_p13 = scmp.lt.s32.totalorder %s2746_s22, %s2741_s30 }
  0x31   : > { %p2744_p9 = pnand %p2742_p6, %p2713_p10  ;;  %p2749_p0 = por %p2748_p13, %p2747_p12 }
  0x33   : > { %p2745_p11 = pneg %p2744_p9 }
  0x35   : > { %p2750_p1 = pnand %p2749_p0, %p2745_p11 }
  0x37   : > { %2753 = shalt.err (!%p2750_p1)
}
  0x38   : > { %s2846_s26 = smov 256   ;;  %s2847_s27 = smov 16  }
  0x39   : > { %2560 = dma.hbm_to_vmem [thread:$0]  (!%p2941_p8), %s193_s12, 4096, %s195_s28, %s183_s0, %s2846_s26, %s2846_s26, %s2847_s27  }
  0x3a   : > { %s232_s11 = scalar_lea.hbm %s3863_s6, %s2839_s14  ;;  %s229_s17 = scalar_lea.vmem [#allocation13], %s2939_s20 }
  0x3b   : > { %s234_s16 = sshll.u32 %s232_s11, 4  ;;  %s236_s23 = sshll.u32 %s229_s17, 4  ;;  %s235_s16 = int_to_ptr.hbm [resolvable:$true] %s234_s16  ;;  %s237_s23 = int_to_ptr.vmem [resolvable:$true] %s236_s23 }
  0x3c   : > { %s2769_s29 = sshra.s32 %s235_s16, 4  ;;  %s2776_s28 = scalar_lea.hbm %s3863_s6, 9  ;;  %s2770_s29 = int_to_ptr.hbm [resolvable:$true] %s2769_s29 }
  0x3d   : > { %s2771_s30 = scalar_lea.hbm %s2770_s29, 1  ;;  %p2777_p6 = scmp.lt.s32.totalorder %s2770_s29, %s3863_s6 }
  0x3e   : > { %p2772_p2 = scmp.ne.s32.totalorder %s2770_s29, %s2771_s30  ;;  %p2778_p9 = scmp.lt.s32.totalorder %s2776_s28, %s2771_s30 }
  0x40   : > { %p2774_p3 = pnand %p2772_p2, %p2713_p10  ;;  %p2779_p11 = por %p2778_p9, %p2777_p6 }
  0x42   : > { %p2775_p4 = pneg %p2774_p3 }
  0x44   : > { %p2780_p12 = pnand %p2779_p11, %p2775_p4 }
  0x46   : > { %2783 = shalt.err (!%p2780_p12)
}
  0x47   : > { %2566 = dma.hbm_to_vmem [thread:$0]  (!%p2941_p8), %s235_s16, 16, %s237_s23, %s2951_s8  }
  0x48   : > { %245 = sbr.rel (%p2970_p5) target bundleno = 933 (0x3a5), region = 36  ;;  %s3010_s14 = sand.u32 (!%p2970_p5), 1, %s2831_s1  }
  0x49   : > { %s1973_s20 = sshll.u32 (!%p2970_p5), %s3010_s14, 8  ;;  %s248_s26 = scalar_lea.sflag (!%p2970_p5), [#allocation10], %s3010_s14 }
  0x4a   : > { %s3014_s27 = scalar_lea.vmem (!%p2970_p5), [#allocation9], %s1973_s20 }
  0x4d   : > { %2818 = dma.done.wait (%p2934_p7), %s248_s26, 4096  }
  0x4e   : > { %2820 = vsyncadd (%p2934_p7), %s248_s26, 4294963200  ;;  %s257_s21 = sand.u32 1, %s2917_s2   ;;  %s2550_s8 = smul.u32 192, %s3010_s14 }
  0x4f   : > { %s258_s25 = scalar_lea.sflag [#allocation12], %s257_s21 }
  0x50   : > { %s3022_s9 = scalar_lea.vmem [#allocation11], %s2550_s8 }
  0x51   : > { %2822 = dma.done.wait (%p2934_p7), %s258_s25, 3088  }
  0x52   : > { %2824 = vsyncadd (%p2934_p7), %s258_s25, 4294964208  ;;  %s270_s10 = scalar_lea.vmem [#allocation13], %s3010_s14  ;;  %p1974_p8 = scmp.ne.s32.totalorder %s2917_s2, 0 }
  0x54   : > { %303 = sbr.rel (%p1974_p8) target bundleno = 138 (0x8a), region = 52 }
  0x59   : > { %v304_v0 = vld [vmem:[%s3860_s3] sm:$0xff]  ;;  %v305_v1 = vld [vmem:[%s3860_s3 + $0x8] sm:$0xff]  ;;  %v306_v2 = vld [vmem:[%s3860_s3 + $0x10] sm:$0xff]  ;;  %v2848_v16 = vmov 0.0  }
  0x5a   : > { %320 = vst [vmem:[#allocation2 + $0x30] sm:$0xff] %v304_v0  ;;  %v307_v3 = vld [vmem:[%s3860_s3 + $0x18] sm:$0xff]  ;;  %v308_v4 = vld [vmem:[%s3860_s3 + $0x20] sm:$0xff]  ;;  %v309_v5 = vld [vmem:[%s3860_s3 + $0x28] sm:$0xff] }
  0x5b   : > { %321 = vst [vmem:[#allocation2] sm:$0xff] %v305_v1  ;;  %v310_v6 = vld [vmem:[%s3860_s3 + $0x30] sm:$0xff]  ;;  %v311_v7 = vld [vmem:[%s3860_s3 + $0x38] sm:$0xff]  ;;  %v312_v8 = vld [vmem:[%s3860_s3 + $0x40] sm:$0xff] }
  0x5c   : > { %322 = vst [vmem:[#allocation2 + $0x58] sm:$0xff] %v306_v2  ;;  %v313_v9 = vld [vmem:[%s3860_s3 + $0x48] sm:$0xff]  ;;  %v314_v10 = vld [vmem:[%s3860_s3 + $0x50] sm:$0xff]  ;;  %v315_v11 = vld [vmem:[%s3860_s3 + $0x58] sm:$0xff] }
  0x5d   : > { %323 = vst [vmem:[#allocation2 + $0x18] sm:$0xff] %v307_v3  ;;  %v316_v12 = vld [vmem:[%s3860_s3 + $0x60] sm:$0xff]  ;;  %v317_v13 = vld [vmem:[%s3860_s3 + $0x68] sm:$0xff]  ;;  %v318_v14 = vld [vmem:[%s3860_s3 + $0x70] sm:$0xff] }
  0x5e   : > { %324 = vst [vmem:[#allocation2 + $0x50] sm:$0xff] %v308_v4  ;;  %v319_v15 = vld [vmem:[%s3860_s3 + $0x78] sm:$0xff] }
  0x5f   : > { %325 = vst [vmem:[#allocation2 + $0x68] sm:$0xff] %v309_v5 }
  0x60   : > { %326 = vst [vmem:[#allocation2 + $0x8] sm:$0xff] %v310_v6 }
  0x61   : > { %327 = vst [vmem:[#allocation2 + $0x48] sm:$0xff] %v311_v7 }
  0x62   : > { %328 = vst [vmem:[#allocation2 + $0x40] sm:$0xff] %v312_v8 }
  0x63   : > { %329 = vst [vmem:[#allocation2 + $0x20] sm:$0xff] %v313_v9 }
  0x64   : > { %330 = vst [vmem:[#allocation2 + $0x10] sm:$0xff] %v314_v10 }
  0x65   : > { %331 = vst [vmem:[#allocation2 + $0x38] sm:$0xff] %v315_v11 }
  0x66   : > { %332 = vst [vmem:[#allocation2 + $0x60] sm:$0xff] %v316_v12 }
  0x67   : > { %333 = vst [vmem:[#allocation2 + $0x70] sm:$0xff] %v317_v13 }
  0x68   : > { %334 = vst [vmem:[#allocation2 + $0x78] sm:$0xff] %v318_v14 }
  0x69   : > { %335 = vst [vmem:[#allocation2 + $0x28] sm:$0xff] %v319_v15 }
  0x6a   : > { %336 = vst [vmem:[#allocation4 + $0x80] sm:$0xff] %v2848_v16 }
  0x6b   : > { %337 = vst [vmem:[#allocation4 + $0xc8] sm:$0xff] %v2848_v16 }
  0x6c   : > { %338 = vst [vmem:[#allocation4 + $0xe8] sm:$0xff] %v2848_v16 }
  0x6d   : > { %339 = vst [vmem:[#allocation4 + $0x78] sm:$0xff] %v2848_v16 }
  0x6e   : > { %340 = vst [vmem:[#allocation4 + $0x8] sm:$0xff] %v2848_v16 }
  0x6f   : > { %341 = vst [vmem:[#allocation4 + $0x90] sm:$0xff] %v2848_v16 }
  0x70   : > { %342 = vst [vmem:[#allocation4 + $0x58] sm:$0xff] %v2848_v16 }
  0x71   : > { %343 = vst [vmem:[#allocation4 + $0xa8] sm:$0xff] %v2848_v16 }
  0x72   : > { %344 = vst [vmem:[#allocation4 + $0xd0] sm:$0xff] %v2848_v16 }
  0x73   : > { %345 = vst [vmem:[#allocation4 + $0xb0] sm:$0xff] %v2848_v16 }
  0x74   : > { %346 = vst [vmem:[#allocation4 + $0x38] sm:$0xff] %v2848_v16 }
  0x75   : > { %347 = vst [vmem:[#allocation4 + $0x40] sm:$0xff] %v2848_v16 }
  0x76   : > { %348 = vst [vmem:[#allocation4 + $0xe0] sm:$0xff] %v2848_v16 }
  0x77   : > { %349 = vst [vmem:[#allocation4 + $0x60] sm:$0xff] %v2848_v16 }
  0x78   : > { %350 = vst [vmem:[#allocation4 + $0x18] sm:$0xff] %v2848_v16 }
  0x79   : > { %351 = vst [vmem:[#allocation4 + $0x68] sm:$0xff] %v2848_v16 }
  0x7a   : > { %352 = vst [vmem:[#allocation4 + $0x10] sm:$0xff] %v2848_v16 }
  0x7b   : > { %353 = vst [vmem:[#allocation4 + $0x70] sm:$0xff] %v2848_v16 }
  0x7c   : > { %354 = vst [vmem:[#allocation4 + $0x50] sm:$0xff] %v2848_v16 }
  0x7d   : > { %355 = vst [vmem:[#allocation4 + $0xa0] sm:$0xff] %v2848_v16 }
  0x7e   : > { %356 = vst [vmem:[#allocation4 + $0xd8] sm:$0xff] %v2848_v16 }
  0x7f   : > { %357 = vst [vmem:[#allocation4 + $0x30] sm:$0xff] %v2848_v16 }
  0x80   : > { %358 = vst [vmem:[#allocation4 + $0x20] sm:$0xff] %v2848_v16 }
  0x81   : > { %359 = vst [vmem:[#allocation4 + $0xf0] sm:$0xff] %v2848_v16 }
  0x82   : > { %360 = vst [vmem:[#allocation4 + $0x88] sm:$0xff] %v2848_v16 }
  0x83   : > { %361 = vst [vmem:[#allocation4 + $0x48] sm:$0xff] %v2848_v16 }
  0x84   : > { %362 = vst [vmem:[#allocation4 + $0xf8] sm:$0xff] %v2848_v16 }
  0x85   : > { %363 = vst [vmem:[#allocation4 + $0xc0] sm:$0xff] %v2848_v16 }
  0x86   : > { %364 = vst [vmem:[#allocation4 + $0xb8] sm:$0xff] %v2848_v16 }
  0x87   : > { %365 = vst [vmem:[#allocation4] sm:$0xff] %v2848_v16 }
  0x88   : > { %366 = vst [vmem:[#allocation4 + $0x28] sm:$0xff] %v2848_v16 }
  0x89   : > { %367 = vst [vmem:[#allocation4 + $0x98] sm:$0xff] %v2848_v16 }
  0x8a PF: > { %v2089_v17 = vld [vmem:[%s3014_s27 + $0xe0] sm:$0xf]  ;;  %v2331_v18 = vld [vmem:[%s3014_s27 + $0xec] sm:$0xf0]  ;;  %v2329_v19 = vld [vmem:[%s3014_s27 + $0xe4] sm:$0xf] }
  0x8b   : > { %v2090_v20 = vor.u32 %v2331_v18, %v2089_v17  ;;  %v2091_v21 = vld [vmem:[%s3014_s27 + $0xf0] sm:$0xf0]  ;;  %v2097_v22 = vld [vmem:[%s3014_s27 + $0xe8] sm:$0xf]  ;;  %v2332_v23 = vld [vmem:[%s3014_s27 + $0xf4] sm:$0xf0] }
  0x8c   : > { %v3084_v24 = vor.u32 %v2329_v19, %v2091_v21  ;;  %v3086_v25 = vor.u32 %v2332_v23, %v2097_v22  ;;  %v2073_v26 = vld [vmem:[%s3014_s27 + $0xc0] sm:$0xf]  ;;  %v2327_v27 = vld [vmem:[%s3014_s27 + $0xcc] sm:$0xf0]  ;;  %v2325_v28 = vld [vmem:[%s3014_s27 + $0xc4] sm:$0xf] }
  0x8d   : > { %2524 = vmatpush.bf16.msra.mxu3 %v2090_v20  ;;  %v2074_v29 = vor.u32 %v2327_v27, %v2073_v26  ;;  %v2075_v30 = vld [vmem:[%s3014_s27 + $0xd0] sm:$0xf0]  ;;  %v2081_v31 = vld [vmem:[%s3014_s27 + $0xc8] sm:$0xf]  ;;  %v2328_v32 = vld [vmem:[%s3014_s27 + $0xd4] sm:$0xf0]  ;;  %584 = vmatpush.bf16.msra.mxu0 %v2090_v20 }
  0x8e   : > { %2532 = vmatpush.bf16.msra.mxu1 %v3084_v24  ;;  %2540 = vmatpush.bf16.msra.mxu2 %v3086_v25  ;;  %v3096_v33 = vor.u32 %v2325_v28, %v2075_v30  ;;  %v3098_v34 = vor.u32 %v2328_v32, %v2081_v31  ;;  %v2057_v35 = vld [vmem:[%s3014_s27 + $0xa0] sm:$0xf]  ;;  %v2323_v36 = vld [vmem:[%s3014_s27 + $0xac] sm:$0xf0]  ;;  %v2321_v37 = vld [vmem:[%s3014_s27 + $0xa4] sm:$0xf] }
  0x8f   : > { %v2059_v38 = vld [vmem:[%s3014_s27 + $0xb0] sm:$0xf0]  ;;  %v2065_v39 = vld [vmem:[%s3014_s27 + $0xa8] sm:$0xf]  ;;  %v2324_v40 = vld [vmem:[%s3014_s27 + $0xb4] sm:$0xf0]  ;;  %v2058_v41 = vor.u32 %v2323_v36, %v2057_v35 }
  0x90   : > { %v3108_v42 = vor.u32 %v2321_v37, %v2059_v38  ;;  %v3110_v43 = vor.u32 %v2324_v40, %v2065_v39  ;;  %v2041_v44 = vld [vmem:[%s3014_s27 + $0x80] sm:$0xf]  ;;  %v2319_v45 = vld [vmem:[%s3014_s27 + $0x8c] sm:$0xf0]  ;;  %v2317_v46 = vld [vmem:[%s3014_s27 + $0x84] sm:$0xf] }
  0x91   : > { %2525 = vmatpush.bf16.msra.mxu3 %v2074_v29  ;;  %585 = vmatpush.bf16.msra.mxu0 %v2074_v29  ;;  %v2043_v47 = vld [vmem:[%s3014_s27 + $0x90] sm:$0xf0]  ;;  %v2049_v48 = vld [vmem:[%s3014_s27 + $0x88] sm:$0xf]  ;;  %v2320_v49 = vld [vmem:[%s3014_s27 + $0x94] sm:$0xf0]  ;;  %v2042_v50 = vor.u32 %v2319_v45, %v2041_v44 }
  0x92   : > { %2533 = vmatpush.bf16.msra.mxu1 %v3096_v33  ;;  %2541 = vmatpush.bf16.msra.mxu2 %v3098_v34  ;;  %v3120_v51 = vor.u32 %v2317_v46, %v2043_v47  ;;  %v3122_v52 = vor.u32 %v2320_v49, %v2049_v48  ;;  %v2025_v53 = vld [vmem:[%s3014_s27 + $0x60] sm:$0xf]  ;;  %v2315_v54 = vld [vmem:[%s3014_s27 + $0x6c] sm:$0xf0]  ;;  %v2313_v55 = vld [vmem:[%s3014_s27 + $0x64] sm:$0xf] }
  0x93   : > { %v2027_v56 = vld [vmem:[%s3014_s27 + $0x70] sm:$0xf0]  ;;  %v2033_v57 = vld [vmem:[%s3014_s27 + $0x68] sm:$0xf]  ;;  %v2316_v58 = vld [vmem:[%s3014_s27 + $0x74] sm:$0xf0]  ;;  %v2026_v59 = vor.u32 %v2315_v54, %v2025_v53 }
  0x94   : > { %v2009_v60 = vld [vmem:[%s3014_s27 + $0x40] sm:$0xf]  ;;  %v3133_v61 = vor.u32 %v2313_v55, %v2027_v56  ;;  %v3135_v62 = vor.u32 %v2316_v58, %v2033_v57  ;;  %v2311_v63 = vld [vmem:[%s3014_s27 + $0x4c] sm:$0xf0]  ;;  %v2309_v0 = vld [vmem:[%s3014_s27 + $0x44] sm:$0xf] }
  0x95   : > { %2526 = vmatpush.bf16.msra.mxu3 %v2058_v41  ;;  %586 = vmatpush.bf16.msra.mxu0 %v2058_v41  ;;  %v2011_v1 = vld [vmem:[%s3014_s27 + $0x50] sm:$0xf0]  ;;  %v2017_v2 = vld [vmem:[%s3014_s27 + $0x48] sm:$0xf]  ;;  %v2312_v3 = vld [vmem:[%s3014_s27 + $0x54] sm:$0xf0]  ;;  %v2010_v4 = vor.u32 %v2311_v63, %v2009_v60 }
  0x96   : > { %2534 = vmatpush.bf16.msra.mxu1 %v3108_v42  ;;  %2542 = vmatpush.bf16.msra.mxu2 %v3110_v43  ;;  %v2014_v5 = vor.u32 %v2309_v0, %v2011_v1  ;;  %v3144_v6 = vor.u32 %v2312_v3, %v2017_v2  ;;  %v1993_v7 = vld [vmem:[%s3014_s27 + $0x20] sm:$0xf]  ;;  %v2307_v8 = vld [vmem:[%s3014_s27 + $0x2c] sm:$0xf0]  ;;  %v2305_v9 = vld [vmem:[%s3014_s27 + $0x24] sm:$0xf] }
  0x97   : > { %v1995_v10 = vld [vmem:[%s3014_s27 + $0x30] sm:$0xf0]  ;;  %v2001_v11 = vld [vmem:[%s3014_s27 + $0x28] sm:$0xf]  ;;  %v2308_v12 = vld [vmem:[%s3014_s27 + $0x34] sm:$0xf0]  ;;  %v1994_v13 = vor.u32 %v2307_v8, %v1993_v7 }
  0x98   : > { %v1998_v14 = vor.u32 %v2305_v9, %v1995_v10  ;;  %v3153_v15 = vor.u32 %v2308_v12, %v2001_v11  ;;  %v1977_v16 = vld [vmem:[%s3014_s27] sm:$0xf]  ;;  %v2303_v17 = vld [vmem:[%s3014_s27 + $0xc] sm:$0xf0]  ;;  %v2301_v18 = vld [vmem:[%s3014_s27 + $0x4] sm:$0xf] }
  0x99   : > { %2527 = vmatpush.bf16.msra.mxu3 %v2042_v50  ;;  %587 = vmatpush.bf16.msra.mxu0 %v2042_v50  ;;  %v1979_v19 = vld [vmem:[%s3014_s27 + $0x10] sm:$0xf0]  ;;  %v1985_v20 = vld [vmem:[%s3014_s27 + $0x8] sm:$0xf]  ;;  %v2304_v21 = vld [vmem:[%s3014_s27 + $0x14] sm:$0xf0]  ;;  %v1978_v23 = vor.u32 %v2303_v17, %v1977_v16 }
  0x9a   : > { %2535 = vmatpush.bf16.msra.mxu1 %v3120_v51  ;;  %2543 = vmatpush.bf16.msra.mxu2 %v3122_v52  ;;  %v372_v22 = vld [vmem:[#allocation2 + $0x50] sm:$0xff]  ;;  %v373_v26 = vld [vmem:[#allocation2 + $0x68] sm:$0xff]  ;;  %v369_v28 = vld [vmem:[#allocation2] sm:$0xff]  ;;  %v1982_v29 = vor.u32 %v2301_v18, %v1979_v19  ;;  %v3162_v30 = vor.u32 %v2304_v21, %v1985_v20  ;;  %s3432_s25 = sld [smem:[#allocation7 + %s2917_s2]] }
  0x9b   : > { %v368_v27 = vld [vmem:[#allocation2 + $0x30] sm:$0xff]  ;;  %v3164_v31 = vpack.c.bf16 %v373_v26, %v372_v22  ;;  %v374_v35 = vld [vmem:[#allocation2 + $0x8] sm:$0xff]  ;;  %v370_v37 = vld [vmem:[#allocation2 + $0x58] sm:$0xff] }
  0x9c   : > { %v3166_v32 = vpack.c.bf16 %v369_v28, %v368_v27  ;;  %v375_v36 = vld [vmem:[#allocation2 + $0x48] sm:$0xff]  ;;  %v371_v38 = vld [vmem:[#allocation2 + $0x18] sm:$0xff]  ;;  %v377_v40 = vld [vmem:[#allocation2 + $0x20] sm:$0xff] }
  0x9d   : > { %2528 = vmatpush.bf16.msra.mxu3 %v2026_v59  ;;  %588 = vmatpush.bf16.msra.mxu0 %v2026_v59  ;;  %v3179_v39 = vpack.c.bf16 %v371_v38, %v370_v37  ;;  %v2099_v44 = vld [vmem:[%s3014_s27 + $0xf8] sm:$0xf0]  ;;  %v2326_v46 = vld [vmem:[%s3014_s27 + $0xcc] sm:$0xf]  ;;  %v378_v54 = vld [vmem:[#allocation2 + $0x10] sm:$0xff] }
  0x9e   : > { %2536 = vmatpush.bf16.msra.mxu1 %v3133_v61  ;;  %2544 = vmatpush.bf16.msra.mxu2 %v3135_v62  ;;  %v2083_v47 = vld [vmem:[%s3014_s27 + $0xd8] sm:$0xf0]  ;;  %v2314_v57 = vld [vmem:[%s3014_s27 + $0x6c] sm:$0xf]  ;;  %v380_v2 = vld [vmem:[#allocation2 + $0x60] sm:$0xff] }
  0x9f   : > { %v2086_v48 = vor.u32 %v2326_v46, %v2083_v47  ;;  %v2067_v49 = vld [vmem:[%s3014_s27 + $0xb8] sm:$0xf0]  ;;  %v2302_v0 = vld [vmem:[%s3014_s27 + $0xc] sm:$0xf]  ;;  %v381_v3 = vld [vmem:[#allocation2 + $0x70] sm:$0xff] }
  0xa0   : > { %v2051_v53 = vld [vmem:[%s3014_s27 + $0x98] sm:$0xf0]  ;;  %v383_v7 = vld [vmem:[#allocation2 + $0x28] sm:$0xff]  ;;  %p2295_p13 = scmp.ne.s32.totalorder %s3432_s25, 0 }
  0xa1   : > { %2529 = vmatpush.bf16.msra.mxu3 %v2010_v4  ;;  %589 = vmatpush.bf16.msra.mxu0 %v2010_v4  ;;  %v379_v55 = vld [vmem:[#allocation2 + $0x38] sm:$0xff] }
  0xa2   : > { %2537 = vmatpush.bf16.msra.mxu1 %v2014_v5  ;;  %2545 = vmatpush.bf16.msra.mxu2 %v3144_v6  ;;  %v2019_v59 = vld [vmem:[%s3014_s27 + $0x58] sm:$0xf0] }
  0xa3   : > { %v1987_v1 = vld [vmem:[%s3014_s27 + $0x18] sm:$0xf0] }
  0xa4   : > { %v1990_v4 = vor.u32 %v2302_v0, %v1987_v1 }
  0xa5   : > { %2530 = vmatpush.bf16.msra.mxu3 %v1994_v13  ;;  %590 = vmatpush.bf16.msra.mxu0 %v1994_v13 }
  0xa6   : > { %2538 = vmatpush.bf16.msra.mxu1 %v1998_v14  ;;  %2546 = vmatpush.bf16.msra.mxu2 %v3153_v15 }
  0xa9   : > { %2531 = vmatpush.bf16.msra.mxu3 %v1978_v23  ;;  %591 = vmatpush.bf16.msra.mxu0 %v1978_v23 }
  0xaa   : > { %2539 = vmatpush.bf16.msra.mxu1 %v1982_v29  ;;  %2547 = vmatpush.bf16.msra.mxu2 %v3162_v30 }
  0xac   : > { %602 = vmatmul.bf16.vlgmr.msra.gmra.mxu3 %v3164_v31  ;;  %592 = vmatmul.bf16.vlgmr.msra.gmra.mxu0 %v3166_v32 }
  0xad   : > { %633 = vmatpush.bf16.msrb.mxu0 %v3084_v24  ;;  %651 = vmatmul.bf16.vlgmr.msra.gmra.mxu1 %v3164_v31  ;;  %v3177_v24 = vpack.c.bf16 %v375_v36, %v374_v35 }
  0xae   : > { %700 = vmatmul.bf16.vlgmr.msra.gmra.mxu2 %v3164_v31 }
  0xb1   : > { %634 = vmatpush.bf16.msrb.mxu0 %v3096_v33  ;;  %v376_v33 = vld [vmem:[#allocation2 + $0x40] sm:$0xff] }
  0xb2   : > { %v3186_v41 = vpack.c.bf16 %v377_v40, %v376_v33 }
  0xb5   : > { %635 = vmatpush.bf16.msrb.mxu0 %v3108_v42  ;;  %v2330_v42 = vld [vmem:[%s3014_s27 + $0xec] sm:$0xf] }
  0xb6   : > { %v2102_v45 = vor.u32 %v2330_v42, %v2099_v44 }
  0xb8   : > { %731 = vmatpush.bf16.msrb.mxu3 %v2102_v45 }
  0xb9   : > { %636 = vmatpush.bf16.msrb.mxu0 %v3120_v51  ;;  %v2318_v51 = vld [vmem:[%s3014_s27 + $0x8c] sm:$0xf] }
  0xba   : > { %v2054_v56 = vor.u32 %v2318_v51, %v2051_v53 }
  0xbc   : > { %607 = vmatmul.bf16.gmra.mxu3 %v3177_v24  ;;  %597 = vmatmul.bf16.gmra.mxu0 %v3179_v39 }
  0xbd   : > { %637 = vmatpush.bf16.msrb.mxu0 %v3133_v61  ;;  %656 = vmatmul.bf16.gmra.mxu1 %v3177_v24  ;;  %v2306_v61 = vld [vmem:[%s3014_s27 + $0x2c] sm:$0xf] }
  0xbe   : > { %705 = vmatmul.bf16.gmra.mxu2 %v3177_v24  ;;  %732 = vmatpush.bf16.msrb.mxu3 %v2086_v48 }
  0xc1   : > { %638 = vmatpush.bf16.msrb.mxu0 %v2014_v5  ;;  %v3222_v5 = vpack.c.bf16 %v381_v3, %v380_v2 }
  0xc5   : > { %639 = vmatpush.bf16.msrb.mxu0 %v1998_v14 }
  0xc9   : > { %640 = vmatpush.bf16.msrb.mxu0 %v1982_v29 }
  0xcc   : > { %612 = vmatmul.bf16.gmra.mxu3 %v3186_v41  ;;  %641 = vmatmul.bf16.vlgmr.msrb.gmra.mxu0 %v3166_v32 }
  0xcd   : > { %682 = vmatpush.bf16.msra.mxu0 %v3086_v25  ;;  %661 = vmatmul.bf16.gmra.mxu1 %v3186_v41  ;;  %v2322_v25 = vld [vmem:[%s3014_s27 + $0xac] sm:$0xf] }
  0xce   : > { %710 = vmatmul.bf16.gmra.mxu2 %v3186_v41  ;;  %v2070_v50 = vor.u32 %v2322_v25, %v2067_v49 }
  0xd0   : > { %733 = vmatpush.bf16.msrb.mxu3 %v2070_v50 }
  0xd1   : > { %683 = vmatpush.bf16.msra.mxu0 %v3098_v34  ;;  %v3204_v34 = vpack.c.bf16 %v379_v55, %v378_v54 }
  0xd4   : > { %734 = vmatpush.bf16.msrb.mxu3 %v2054_v56 }
  0xd5   : > { %684 = vmatpush.bf16.msra.mxu0 %v3110_v43  ;;  %v2035_v43 = vld [vmem:[%s3014_s27 + $0x78] sm:$0xf0] }
  0xd6   : > { %v2038_v58 = vor.u32 %v2314_v57, %v2035_v43 }
  0xd8   : > { %735 = vmatpush.bf16.msrb.mxu3 %v2038_v58 }
  0xd9   : > { %685 = vmatpush.bf16.msra.mxu0 %v3122_v52  ;;  %v2310_v52 = vld [vmem:[%s3014_s27 + $0x4c] sm:$0xf] }
  0xda   : > { %v2022_v60 = vor.u32 %v2310_v52, %v2019_v59 }
  0xdc   : > { %617 = vmatmul.bf16.gmra.mxu3 %v3204_v34  ;;  %646 = vmatmul.bf16.gmra.mxu0 %v3179_v39 }
  0xdd   : > { %686 = vmatpush.bf16.msra.mxu0 %v3135_v62  ;;  %666 = vmatmul.bf16.gmra.mxu1 %v3204_v34  ;;  %v2003_v62 = vld [vmem:[%s3014_s27 + $0x38] sm:$0xf0]  ;;  %s1539_s27 = sld [smem:[#allocation8 + %s2917_s2]] }
  0xde   : > { %715 = vmatmul.bf16.gmra.mxu2 %v3204_v34  ;;  %736 = vmatpush.bf16.msrb.mxu3 %v2022_v60  ;;  %v2006_v63 = vor.u32 %v2306_v61, %v2003_v62 }
  0xe1   : > { %687 = vmatpush.bf16.msra.mxu0 %v3144_v6  ;;  %v382_v6 = vld [vmem:[#allocation2 + $0x78] sm:$0xff] }
  0xe2   : > { %737 = vmatpush.bf16.msrb.mxu3 %v2006_v63  ;;  %v3228_v8 = vpack.c.bf16 %v383_v7, %v382_v6 }
  0xe3   : > { %p1540_p7 = scmp.eq.s32.totalorder %s1539_s27, 0  ;;  %p1592_p10 = scmp.eq.s32.totalorder %s1539_s27, 1 }
  0xe5   : > { %688 = vmatpush.bf16.msra.mxu0 %v3153_v15  ;;  %s1573_s14 = scalar_select %p1540_p7, 1, 0 }
  0xe6   : > { %738 = vmatpush.bf16.msrb.mxu3 %v1990_v4 }
  0xe9   : > { %689 = vmatpush.bf16.msra.mxu0 %v3162_v30 }
  0xec   : > { %622 = vmatmul.bf16.gmra.mxu3 %v3222_v5  ;;  %690 = vmatmul.bf16.vlgmr.msra.gmra.mxu0 %v3166_v32 }
  0xed   : > { %671 = vmatmul.bf16.gmra.mxu1 %v3222_v5 }
  0xee   : > { %720 = vmatmul.bf16.gmra.mxu2 %v3222_v5 }
  0xfc   : > { %627 = vmatmul.bf16.gmra.mxu3 %v3228_v8  ;;  %695 = vmatmul.bf16.gmra.mxu0 %v3179_v39 }
  0xfd   : > { %676 = vmatmul.bf16.gmra.mxu1 %v3228_v8 }
  0xfe   : > { %725 = vmatmul.bf16.gmra.mxu2 %v3228_v8 }
 0x10c   : > { %739 = vmatmul.bf16.vlgmr.msrb.gmra.mxu3 %v3166_v32 }
 0x11c   : > { %744 = vmatmul.bf16.gmra.mxu3 %v3179_v39 }
 0x129   : > { %v3236_v9 = vpop.f32.mrf.mxu0 }
 0x12a   : > { %v652_v10 = vpop.f32.mrf.mxu1 }
 0x12c   : > { %749 = vmatmul.bf16.gmra.mxu3 %v3164_v31 }
 0x12f   : > { %v3239_v11 = vpop.f32.mrf.mxu3 }
 0x131   : > { %v701_v12 = vpop.f32.mrf.mxu2  ;;  %v3241_v13 = vpop.f32.mrf.mxu0 }
 0x132   : > { %v654_v14 = vpop.f32.mrf.mxu1 }
 0x133   : > { %v2394_v15 = vpack.c.bf16 %v654_v14, %v652_v10 }
 0x135   : > { %2502 = vst [vmem:[#allocation3 + $0x10] sm:$0xff] %v2394_v15  }
 0x137   : > { %v3243_v16 = vpop.f32.mrf.mxu3 }
 0x139   : > { %v703_v17 = vpop.f32.mrf.mxu2  ;;  %v3245_v19 = vpop.f32.mrf.mxu0 }
 0x13a   : > { %v2434_v18 = vpack.c.bf16 %v703_v17, %v701_v12  ;;  %v657_v20 = vpop.f32.mrf.mxu1 }
 0x13c   : > { %2510 = vst [vmem:[#allocation3 + $0x30] sm:$0xff] %v2434_v18   ;;  %754 = vmatmul.bf16.gmra.mxu3 %v3177_v24 }
 0x13f   : > { %v3248_v21 = vpop.f32.mrf.mxu3 }
 0x141   : > { %v706_v22 = vpop.f32.mrf.mxu2  ;;  %v3250_v23 = vpop.f32.mrf.mxu0 }
 0x142   : > { %v659_v26 = vpop.f32.mrf.mxu1 }
 0x143   : > { %v2399_v27 = vpack.c.bf16 %v659_v26, %v657_v20 }
 0x145   : > { %2503 = vst [vmem:[#allocation3 + $0xa0] sm:$0xff] %v2399_v27  }
 0x147   : > { %v3252_v28 = vpop.f32.mrf.mxu3 }
 0x149   : > { %v708_v29 = vpop.f32.mrf.mxu2  ;;  %v642_v31 = vpop.f32.mrf.mxu0 }
 0x14a   : > { %v2439_v30 = vpack.c.bf16 %v708_v29, %v706_v22  ;;  %v662_v32 = vpop.f32.mrf.mxu1 }
 0x14c   : > { %2511 = vst [vmem:[#allocation3 + $0xb0] sm:$0xff] %v2439_v30   ;;  %759 = vmatmul.bf16.gmra.mxu3 %v3186_v41  ;;  %v2360_v29 = vld [vmem:[#allocation3 + $0xa0] sm:$0xff] }
 0x14f   : > { %v3255_v35 = vpop.f32.mrf.mxu3 }
 0x151   : > { %v711_v36 = vpop.f32.mrf.mxu2  ;;  %v644_v37 = vpop.f32.mrf.mxu0 }
 0x152   : > { %v664_v38 = vpop.f32.mrf.mxu1  ;;  %v2384_v24 = vpack.c.bf16 %v644_v37, %v642_v31  ;;  %v2359_v31 = vld [vmem:[#allocation3 + $0x10] sm:$0xff] }
 0x153   : > { %v2404_v39 = vpack.c.bf16 %v664_v38, %v662_v32  ;;  %v2367_v38 = vld [vmem:[#allocation3 + $0x30] sm:$0xff] }
 0x154   : > { %2385 = vst [vmem:[#allocation3 + $0xa8] sm:$0xff] %v2384_v24  }
 0x155   : > { %2504 = vst [vmem:[#allocation3 + $0x60] sm:$0xff] %v2404_v39   ;;  %v2105_v39 = vld [vmem:[%s3022_s9] sm:$0xf] }
 0x157   : > { %v3257_v33 = vpop.f32.mrf.mxu3 }
 0x159   : > { %v713_v40 = vpop.f32.mrf.mxu2  ;;  %v647_v44 = vpop.f32.mrf.mxu0 }
 0x15a   : > { %v2444_v42 = vpack.c.bf16 %v713_v40, %v711_v36  ;;  %v667_v45 = vpop.f32.mrf.mxu1  ;;  %v2368_v36 = vld [vmem:[#allocation3 + $0xb0] sm:$0xff]  ;;  %v2334_v40 = vld [vmem:[%s3022_s9 + $0x8] sm:$0xf0] }
 0x15b   : > { %v2357_v24 = vld [vmem:[#allocation3 + $0xa8] sm:$0xff] }
 0x15c   : > { %2512 = vst [vmem:[#allocation3 + $0x50] sm:$0xff] %v2444_v42   ;;  %764 = vmatmul.bf16.gmra.mxu3 %v3204_v34  ;;  %v2361_v20 = vld [vmem:[#allocation3 + $0x60] sm:$0xff] }
 0x15f   : > { %v3260_v46 = vpop.f32.mrf.mxu3 }
 0x161   : > { %v716_v41 = vpop.f32.mrf.mxu2  ;;  %v649_v47 = vpop.f32.mrf.mxu0 }
 0x162   : > { %v669_v48 = vpop.f32.mrf.mxu1  ;;  %v2389_v25 = vpack.c.bf16 %v649_v47, %v647_v44 }
 0x163   : > { %v2409_v49 = vpack.c.bf16 %v669_v48, %v667_v45  ;;  %v2369_v30 = vld [vmem:[#allocation3 + $0x50] sm:$0xff]  ;;  %v2333_v48 = vld [vmem:[%s3022_s9 + $0x4] sm:$0xf] }
 0x164   : > { %2501 = vst [vmem:[#allocation3 + $0x68] sm:$0xff] %v2389_v25   ;;  %v2107_v25 = vld [vmem:[%s3022_s9 + $0xc] sm:$0xf0] }
 0x165   : > { %2505 = vst [vmem:[#allocation3 + $0x28] sm:$0xff] %v2409_v49  }
 0x167   : > { %v3262_v50 = vpop.f32.mrf.mxu3 }
 0x169   : > { %v718_v51 = vpop.f32.mrf.mxu2  ;;  %v691_v54 = vpop.f32.mrf.mxu0 }
 0x16a   : > { %v2449_v53 = vpack.c.bf16 %v718_v51, %v716_v41  ;;  %v672_v55 = vpop.f32.mrf.mxu1  ;;  %v2106_v41 = vor.u32 %v2334_v40, %v2105_v39  ;;  %v2110_v51 = vor.u32 %v2333_v48, %v2107_v25  ;;  %v2349_v39 = vld [vmem:[%s3022_s9 + $0x80] sm:$0xf0]  ;;  %v2177_v25 = vld [vmem:[%s3022_s9 + $0x90] sm:$0xf] }
 0x16b   : > { %v2358_v37 = vld [vmem:[#allocation3 + $0x68] sm:$0xff] }
 0x16c   : > { %2513 = vst [vmem:[#allocation3 + $0xb8] sm:$0xff] %v2449_v53   ;;  %769 = vmatmul.bf16.gmra.mxu3 %v3222_v5  ;;  %v2362_v17 = vld [vmem:[#allocation3 + $0x28] sm:$0xff]  ;;  %v2117_v53 = vld [vmem:[%s3022_s9 + $0x18] sm:$0xf] }
 0x16f   : > { %v3265_v56 = vpop.f32.mrf.mxu3 }
 0x171   : > { %v721_v34 = vpop.f32.mrf.mxu2  ;;  %v693_v57 = vpop.f32.mrf.mxu0 }
 0x172   : > { %v674_v43 = vpop.f32.mrf.mxu1  ;;  %v2424_v58 = vpack.c.bf16 %v693_v57, %v691_v54  ;;  %v2337_v54 = vld [vmem:[%s3022_s9 + $0x20] sm:$0xf0] }
 0x173   : > { %v2414_v52 = vpack.c.bf16 %v674_v43, %v672_v55  ;;  %v2370_v27 = vld [vmem:[#allocation3 + $0xb8] sm:$0xff]  ;;  %v2118_v57 = vor.u32 %v2337_v54, %v2117_v53 }
 0x174   : > { %2508 = vst [vmem:[#allocation3 + $0x70] sm:$0xff] %v2424_v58   ;;  %v2336_v43 = vld [vmem:[%s3022_s9 + $0x1c] sm:$0xf]  ;;  %v2119_v58 = vld [vmem:[%s3022_s9 + $0x24] sm:$0xf0] }
 0x175   : > { %2506 = vst [vmem:[#allocation3 + $0x38] sm:$0xff] %v2414_v52  }
 0x177   : > { %v3267_v59 = vpop.f32.mrf.mxu3 }
 0x179   : > { %v723_v60 = vpop.f32.mrf.mxu2  ;;  %v696_v62 = vpop.f32.mrf.mxu0 }
 0x17a   : > { %v2454_v61 = vpack.c.bf16 %v723_v60, %v721_v34  ;;  %v677_v63 = vpop.f32.mrf.mxu1  ;;  %v2122_v60 = vor.u32 %v2336_v43, %v2119_v58 }
 0x17b   : > { %v2365_v47 = vld [vmem:[#allocation3 + $0x70] sm:$0xff] }
 0x17c   : > { %2514 = vst [vmem:[#allocation3 + $0x78] sm:$0xff] %v2454_v61   ;;  %774 = vmatmul.bf16.gmra.mxu3 %v3228_v8  ;;  %v2363_v14 = vld [vmem:[#allocation3 + $0x38] sm:$0xff]  ;;  %v2129_v61 = vld [vmem:[%s3022_s9 + $0x30] sm:$0xf] }
 0x17f   : > { %v3270_v0 = vpop.f32.mrf.mxu3 }
 0x181   : > { %v726_v1 = vpop.f32.mrf.mxu2  ;;  %v698_v2 = vpop.f32.mrf.mxu0 }
 0x182   : > { %v679_v3 = vpop.f32.mrf.mxu1  ;;  %v2429_v4 = vpack.c.bf16 %v698_v2, %v696_v62  ;;  %v2340_v62 = vld [vmem:[%s3022_s9 + $0x38] sm:$0xf0] }
 0x183   : > { %v2419_v5 = vpack.c.bf16 %v679_v3, %v677_v63  ;;  %v2371_v18 = vld [vmem:[#allocation3 + $0x78] sm:$0xff]  ;;  %v2130_v2 = vor.u32 %v2340_v62, %v2129_v61  ;;  %v2339_v3 = vld [vmem:[%s3022_s9 + $0x34] sm:$0xf] }
 0x184   : > { %2509 = vst [vmem:[#allocation3 + $0x88] sm:$0xff] %v2429_v4   ;;  %v2131_v4 = vld [vmem:[%s3022_s9 + $0x3c] sm:$0xf0] }
 0x185   : > { %2507 = vst [vmem:[#allocation3 + $0x20] sm:$0xff] %v2419_v5  }
 0x187   : > { %v3272_v6 = vpop.f32.mrf.mxu3 }
 0x189   : > { %v728_v7 = vpop.f32.mrf.mxu2 }
 0x18a   : > { %v2459_v10 = vpack.c.bf16 %v728_v7, %v726_v1  ;;  %v2134_v7 = vor.u32 %v2339_v3, %v2131_v4 }
 0x18b   : > { %v2366_v45 = vld [vmem:[#allocation3 + $0x88] sm:$0xff] }
 0x18c   : > { %2515 = vst [vmem:[#allocation3 + $0x40] sm:$0xff] %v2459_v10   ;;  %v2364_v12 = vld [vmem:[#allocation3 + $0x20] sm:$0xff]  ;;  %v2141_v10 = vld [vmem:[%s3022_s9 + $0x48] sm:$0xf] }
 0x18d   : > { %1228 = vmatpush.bf16.msrb.mxu0 %v2364_v12  ;;  %v2343_v12 = vld [vmem:[%s3022_s9 + $0x50] sm:$0xf0] }
 0x18f   : > { %v740_v15 = vpop.f32.mrf.mxu3 }
 0x191   : > { %1229 = vmatpush.bf16.msrb.mxu0 %v2363_v14 }
 0x193   : > { %v2372_v8 = vld [vmem:[#allocation3 + $0x40] sm:$0xff] }
 0x194   : > { %1277 = vmatpush.bf16.msrb.mxu1 %v2372_v8  ;;  %v2142_v8 = vor.u32 %v2343_v12, %v2141_v10  ;;  %v2113_v10 = vld [vmem:[%s3022_s9 + $0x8] sm:$0xf]  ;;  %v2335_v12 = vld [vmem:[%s3022_s9 + $0x10] sm:$0xf0] }
 0x195   : > { %1230 = vmatpush.bf16.msrb.mxu0 %v2362_v17  ;;  %v2342_v17 = vld [vmem:[%s3022_s9 + $0x4c] sm:$0xf] }
 0x197   : > { %v742_v22 = vpop.f32.mrf.mxu3 }
 0x198   : > { %v2464_v26 = vpack.c.bf16 %v742_v22, %v740_v15  ;;  %1278 = vmatpush.bf16.msrb.mxu1 %v2371_v18  ;;  %v2143_v18 = vld [vmem:[%s3022_s9 + $0x54] sm:$0xf0] }
 0x199   : > { %1231 = vmatpush.bf16.msrb.mxu0 %v2361_v20  ;;  %v2146_v22 = vor.u32 %v2342_v17, %v2143_v18  ;;  %v2338_v17 = vld [vmem:[%s3022_s9 + $0x28] sm:$0xf0] }
 0x19a   : > { %2516 = vst [vmem:[#allocation3 + $0x8] sm:$0xff] %v2464_v26   ;;  %v2153_v26 = vld [vmem:[%s3022_s9 + $0x60] sm:$0xf] }
 0x19c   : > { %1279 = vmatpush.bf16.msrb.mxu1 %v2370_v27  ;;  %v2346_v27 = vld [vmem:[%s3022_s9 + $0x68] sm:$0xf0] }
 0x19d   : > { %1232 = vmatpush.bf16.msrb.mxu0 %v2360_v29 }
 0x19f   : > { %v745_v32 = vpop.f32.mrf.mxu3 }
 0x1a0   : > { %1280 = vmatpush.bf16.msrb.mxu1 %v2369_v30 }
 0x1a1   : > { %1233 = vmatpush.bf16.msrb.mxu0 %v2359_v31  ;;  %v2154_v31 = vor.u32 %v2346_v27, %v2153_v26  ;;  %v2149_v27 = vld [vmem:[%s3022_s9 + $0x50] sm:$0xf] }
 0x1a4   : > { %1281 = vmatpush.bf16.msrb.mxu1 %v2368_v36  ;;  %v2155_v36 = vld [vmem:[%s3022_s9 + $0x6c] sm:$0xf0] }
 0x1a5   : > { %1234 = vmatpush.bf16.msrb.mxu0 %v2358_v37 }
 0x1a7   : > { %v747_v42 = vpop.f32.mrf.mxu3 }
 0x1a8   : > { %v2469_v44 = vpack.c.bf16 %v747_v42, %v745_v32  ;;  %1282 = vmatpush.bf16.msrb.mxu1 %v2367_v38  ;;  %v2345_v32 = vld [vmem:[%s3022_s9 + $0x64] sm:$0xf] }
 0x1a9   : > { %1235 = vmatpush.bf16.msrb.mxu0 %v2357_v24  ;;  %v2158_v38 = vor.u32 %v2345_v32, %v2155_v36  ;;  %v2165_v24 = vld [vmem:[%s3022_s9 + $0x78] sm:$0xf]  ;;  %v2347_v32 = vld [vmem:[%s3022_s9 + $0x70] sm:$0xf0] }
 0x1aa   : > { %2517 = vst [vmem:[#allocation3 + $0x90] sm:$0xff] %v2469_v44   ;;  %v2166_v44 = vor.u32 %v2349_v39, %v2165_v24  ;;  %v2185_v39 = vld [vmem:[%s3022_s9 + $0x98] sm:$0xf] }
 0x1ac   : > { %1283 = vmatpush.bf16.msrb.mxu1 %v2366_v45  ;;  %1236 = vmatmul.bf16.vlgmr.msrb.gmra.mxu0 %v2106_v41  ;;  %v2348_v45 = vld [vmem:[%s3022_s9 + $0x7c] sm:$0xf]  ;;  %v2167_v41 = vld [vmem:[%s3022_s9 + $0x84] sm:$0xf0] }
 0x1ad   : > { %v2170_v48 = vor.u32 %v2348_v45, %v2167_v41 }
 0x1af   : > { %v750_v49 = vpop.f32.mrf.mxu3 }
 0x1b0   : > { %1284 = vmatpush.bf16.msrb.mxu1 %v2365_v47 }
 0x1b3   : > { %1285 = vmatmul.bf16.vlgmr.msrb.gmra.mxu1 %v2110_v51 }
 0x1b7   : > { %v752_v55 = vpop.f32.mrf.mxu3 }
 0x1b8   : > { %v2474_v34 = vpack.c.bf16 %v752_v55, %v750_v49  ;;  %v2352_v49 = vld [vmem:[%s3022_s9 + $0x98] sm:$0xf0]  ;;  %v2351_v55 = vld [vmem:[%s3022_s9 + $0x94] sm:$0xf] }
 0x1b9   : > { %v2178_v54 = vor.u32 %v2352_v49, %v2177_v25 }
 0x1ba   : > { %2518 = vst [vmem:[#allocation3 + $0x98] sm:$0xff] %v2474_v34   ;;  %v2179_v34 = vld [vmem:[%s3022_s9 + $0x9c] sm:$0xf0] }
 0x1bc   : > { %1241 = vmatmul.bf16.gmra.mxu0 %v2118_v57  ;;  %v2182_v57 = vor.u32 %v2351_v55, %v2179_v34 }
 0x1bf   : > { %v755_v52 = vpop.f32.mrf.mxu3 }
 0x1c3   : > { %1290 = vmatmul.bf16.gmra.mxu1 %v2122_v60  ;;  %v2355_v60 = vld [vmem:[%s3022_s9 + $0xb0] sm:$0xf0] }
 0x1c7   : > { %v757_v63 = vpop.f32.mrf.mxu3 }
 0x1c8   : > { %v2479_v1 = vpack.c.bf16 %v757_v63, %v755_v52  ;;  %v2189_v52 = vld [vmem:[%s3022_s9 + $0xa8] sm:$0xf]  ;;  %v2354_v63 = vld [vmem:[%s3022_s9 + $0xac] sm:$0xf] }
 0x1c9   : > { %v2190_v62 = vor.u32 %v2355_v60, %v2189_v52 }
 0x1ca   : > { %2519 = vst [vmem:[#allocation3 + $0x58] sm:$0xff] %v2479_v1   ;;  %v2191_v1 = vld [vmem:[%s3022_s9 + $0xb4] sm:$0xf0] }
 0x1cb   : > { %v2194_v3 = vor.u32 %v2354_v63, %v2191_v1 }
 0x1cc   : > { %1246 = vmatmul.bf16.gmra.mxu0 %v2130_v2 }
 0x1cf   : > { %v760_v5 = vpop.f32.mrf.mxu3 }
 0x1d1   : > { %v2376_v4 = vld [vmem:[#allocation3 + $0x58] sm:$0xff] }
 0x1d3   : > { %1295 = vmatmul.bf16.gmra.mxu1 %v2134_v7  ;;  %v2374_v7 = vld [vmem:[#allocation3 + $0x90] sm:$0xff] }
 0x1d7   : > { %v762_v14 = vpop.f32.mrf.mxu3 }
 0x1d8   : > { %v2484_v15 = vpack.c.bf16 %v762_v14, %v760_v5  ;;  %v2375_v5 = vld [vmem:[#allocation3 + $0x98] sm:$0xff]  ;;  %v2373_v14 = vld [vmem:[#allocation3 + $0x8] sm:$0xff] }
 0x1da   : > { %2520 = vst [vmem:[#allocation3 + $0x18] sm:$0xff] %v2484_v15   ;;  %v2114_v15 = vor.u32 %v2335_v12, %v2113_v10 }
 0x1dc   : > { %1251 = vmatmul.bf16.gmra.mxu0 %v2142_v8  ;;  %v2125_v8 = vld [vmem:[%s3022_s9 + $0x20] sm:$0xf] }
 0x1dd   : > { %v2126_v18 = vor.u32 %v2338_v17, %v2125_v8 }
 0x1df   : > { %v765_v20 = vpop.f32.mrf.mxu3 }
 0x1e1   : > { %v2377_v2 = vld [vmem:[#allocation3 + $0x18] sm:$0xff] }
 0x1e3   : > { %1300 = vmatmul.bf16.gmra.mxu1 %v2146_v22  ;;  %v2341_v22 = vld [vmem:[%s3022_s9 + $0x40] sm:$0xf0] }
 0x1e7   : > { %v767_v29 = vpop.f32.mrf.mxu3 }
 0x1e8   : > { %v2489_v30 = vpack.c.bf16 %v767_v29, %v765_v20  ;;  %v2137_v20 = vld [vmem:[%s3022_s9 + $0x38] sm:$0xf]  ;;  %v2344_v29 = vld [vmem:[%s3022_s9 + $0x58] sm:$0xf0] }
 0x1e9   : > { %v2138_v26 = vor.u32 %v2341_v22, %v2137_v20 }
 0x1ea   : > { %2521 = vst [vmem:[#allocation3 + $0x80] sm:$0xff] %v2489_v30   ;;  %v2150_v30 = vor.u32 %v2344_v29, %v2149_v27 }
 0x1ec   : > { %1256 = vmatmul.bf16.gmra.mxu0 %v2154_v31  ;;  %v2161_v31 = vld [vmem:[%s3022_s9 + $0x68] sm:$0xf] }
 0x1ed   : > { %v2162_v36 = vor.u32 %v2347_v32, %v2161_v31 }
 0x1ef   : > { %v770_v37 = vpop.f32.mrf.mxu3 }
 0x1f1   : > { %v2378_v61 = vld [vmem:[#allocation3 + $0x80] sm:$0xff] }
 0x1f3   : > { %1305 = vmatmul.bf16.gmra.mxu1 %v2158_v38  ;;  %v2350_v38 = vld [vmem:[%s3022_s9 + $0x88] sm:$0xf0] }
 0x1f7   : > { %v772_v40 = vpop.f32.mrf.mxu3 }
 0x1f8   : > { %v2494_v42 = vpack.c.bf16 %v772_v40, %v770_v37  ;;  %v2173_v37 = vld [vmem:[%s3022_s9 + $0x80] sm:$0xf]  ;;  %v2353_v40 = vld [vmem:[%s3022_s9 + $0xa0] sm:$0xf0] }
 0x1f9   : > { %v2174_v24 = vor.u32 %v2350_v38, %v2173_v37 }
 0x1fa   : > { %2522 = vst [vmem:[#allocation3] sm:$0xff] %v2494_v42   ;;  %v2186_v42 = vor.u32 %v2353_v40, %v2185_v39  ;;  %v1574_v40 = vstv %s1573_s14 }
 0x1fb   : > { %vm3347_vm0 = vcmp.eq.s32.totalorder %v1574_v40, 1 }
 0x1fc   : > { %1261 = vmatmul.bf16.gmra.mxu0 %v2166_v44 }
 0x1ff   : > { %v775_v47 = vpop.f32.mrf.mxu3 }
 0x201   : > { %v2379_v58 = vld [vmem:[#allocation3] sm:$0xff] }
 0x203   : > { %1310 = vmatmul.bf16.gmra.mxu1 %v2170_v48  ;;  %v2356_v48 = vld [vmem:[%s3022_s9 + $0xb8] sm:$0xf0] }
 0x207   : > { %v777_v51 = vpop.f32.mrf.mxu3 }
 0x208   : > { %v2499_v53 = vpack.c.bf16 %v777_v51, %v775_v47  ;;  %v2197_v47 = vld [vmem:[%s3022_s9 + $0xb0] sm:$0xf]  ;;  %s1626_s9 = scalar_select %p1592_p10, 1, 0 }
 0x209   : > { %v2198_v49 = vor.u32 %v2356_v48, %v2197_v47 }
 0x20a   : > { %2523 = vst [vmem:[#allocation3 + $0x48] sm:$0xff] %v2499_v53  }
 0x20c   : > { %1266 = vmatmul.bf16.gmra.mxu0 %v2178_v54 }
 0x211   : > { %v2380_v43 = vld [vmem:[#allocation3 + $0x48] sm:$0xff] }
 0x212   : > { %1326 = vmatpush.bf16.msrb.mxu2 %v2380_v43  ;;  %v3325_v43 = vld [vmem:[%s270_s10] ss:$0 sm:$0xff]  ;;  %s3376_s10 = sld [smem:[#allocation6 + %s2917_s2]] }
 0x213   : > { %1315 = vmatmul.bf16.gmra.mxu1 %v2182_v57 }
 0x216   : > { %1327 = vmatpush.bf16.msrb.mxu2 %v2379_v58 }
 0x218   : > { %p1646_p5 = scmp.eq.s32.totalorder %s3376_s10, 1 }
 0x21a   : > { %1328 = vmatpush.bf16.msrb.mxu2 %v2378_v61  ;;  %s3418_s8 = scalar_select %p1646_p5, 1, 0 }
 0x21c   : > { %1271 = vmatmul.bf16.gmra.mxu0 %v2190_v62 }
 0x21e   : > { %1329 = vmatpush.bf16.msrb.mxu2 %v2377_v2 }
 0x222   : > { %1330 = vmatpush.bf16.msrb.mxu2 %v2376_v4 }
 0x223   : > { %1320 = vmatmul.bf16.gmra.mxu1 %v2194_v3 }
 0x226   : > { %1331 = vmatpush.bf16.msrb.mxu2 %v2375_v5 }
 0x229   : > { %v1237_v44 = vpop.f32.mrf.mxu0 }
 0x22a   : > { %1332 = vmatpush.bf16.msrb.mxu2 %v2374_v7  ;;  %v1238_v34 = vadd.f32 %v1237_v44, %v3236_v9 }
 0x22e   : > { %1333 = vmatpush.bf16.msrb.mxu2 %v2373_v14 }
 0x230   : > { %v1286_v45 = vpop.f32.mrf.mxu1 }
 0x231   : > { %1334 = vmatmul.bf16.vlgmr.msrb.gmra.mxu2 %v2114_v15  ;;  %v1239_v41 = vpop.f32.mrf.mxu0  ;;  %v1287_v57 = vadd.f32 %v1286_v45, %v1238_v34  ;;  %v1541_v45 = vld [vmem:[#allocation4 + $0x80] sm:$0xff] }
 0x232   : > { %v1240_v62 = vadd.f32 %v1239_v41, %v3241_v13 }
 0x238   : > { %v1288_v25 = vpop.f32.mrf.mxu1 }
 0x239   : > { %v1242_v51 = vpop.f32.mrf.mxu0  ;;  %v1289_v2 = vadd.f32 %v1288_v25, %v1240_v62  ;;  %v1627_v25 = vstv %s1626_s9 }
 0x23a   : > { %v1243_v12 = vadd.f32 %v1242_v51, %v3245_v19  ;;  %vm3360_vm1 = vcmp.eq.s32.totalorder %v1627_v25, 1 }
 0x240   : > { %v1291_v53 = vpop.f32.mrf.mxu1 }
 0x241   : > { %1339 = vmatmul.bf16.gmra.mxu2 %v2126_v18  ;;  %v1244_v54 = vpop.f32.mrf.mxu0  ;;  %v1292_v17 = vadd.f32 %v1291_v53, %v1243_v12 }
 0x248   : > { %v1293_v55 = vpop.f32.mrf.mxu1 }
 0x249   : > { %v1247_v60 = vpop.f32.mrf.mxu0 }
 0x24a   : > { %v1248_v34 = vadd.f32 %v1247_v60, %v3239_v11 }
 0x250   : > { %v1296_v63 = vpop.f32.mrf.mxu1 }
 0x251   : > { %1344 = vmatmul.bf16.gmra.mxu2 %v2138_v26  ;;  %v3332_v14 = vpop.f32.mrf.mxu0 }
 0x258   : > { %v3334_v18 = vpop.f32.mrf.mxu1 }
 0x259   : > { %v3342_v38 = vpop.f32.mrf.mxu0 }
 0x260   : > { %v3345_v44 = vpop.f32.mrf.mxu1 }
 0x261   : > { %1349 = vmatmul.bf16.gmra.mxu2 %v2150_v30  ;;  %v1245_v30 = vadd.f32 %v1244_v54, %v3250_v23  ;;  %v1594_v54 = vld [vmem:[#allocation4 + $0x10] sm:$0xff]  ;;  %v3365_v60 = vpop.f32.mrf.mxu0 }
 0x263   : > { %v1294_v37 = vadd.f32 %v1293_v55, %v1245_v30 }
 0x271   : > { %1354 = vmatmul.bf16.gmra.mxu2 %v2162_v36 }
 0x281   : > { %1359 = vmatmul.bf16.gmra.mxu2 %v2174_v24 }
 0x291   : > { %1364 = vmatmul.bf16.gmra.mxu2 %v2186_v42 }
 0x2a1   : > { %1369 = vmatmul.bf16.gmra.mxu2 %v2198_v49 }
 0x2b4   : > { %v1335_v58 = vpop.f32.mrf.mxu2 }
 0x2b5   : > { %v1336_v52 = vadd.f32 %v1335_v58, %v1287_v57 }
 0x2b7   : > { %v1379_v61 = vadd.f32 %v3325_v43, %v1336_v52 }
 0x2b9   : > { %v1395_v1 = vmul.f32 %v1379_v61, %v1379_v61 }
 0x2bb   : > { %v1411_v3 = vmul.f32 %v1395_v1, %v1379_v61  ;;  %v1297_v1 = vadd.f32 %v1296_v63, %v1248_v34  ;;  %v3373_v63 = vpop.f32.mrf.mxu1 }
 0x2bc   : > { %v1337_v4 = vpop.f32.mrf.mxu2 }
 0x2bd   : > { %v1427_v5 = vmul.f32 0.044715, %v1411_v3  ;;  %v1338_v7 = vadd.f32 %v1337_v4, %v1289_v2 }
 0x2bf   : > { %v1443_v9 = vadd.f32 %v1427_v5, %v1379_v61  ;;  %v1380_v10 = vadd.f32 %v3325_v43, %v1338_v7  ;;  %v1542_v7 = vld [vmem:[#allocation4 + $0xc8] sm:$0xff] }
 0x2c1   : > { %v1459_v15 = vmul.f32 0.7978846, %v1443_v9  ;;  %v1396_v8 = vmul.f32 %v1380_v10, %v1380_v10 }
 0x2c3   : > { %2609 = vtanh.f32 %v1459_v15  ;;  %v1412_v13 = vmul.f32 %v1396_v8, %v1380_v10 }
 0x2c4   : > { %v1340_v20 = vpop.f32.mrf.mxu2 }
 0x2c5   : > { %v1428_v22 = vmul.f32 0.044715, %v1412_v13  ;;  %v1341_v26 = vadd.f32 %v1340_v20, %v1292_v17 }
 0x2c7   : > { %v1444_v27 = vadd.f32 %v1428_v22, %v1380_v10  ;;  %v3337_v29 = vadd.f32 %v3325_v43, %v1341_v26  ;;  %v1595_v26 = vld [vmem:[#allocation4 + $0x70] sm:$0xff] }
 0x2c9   : > { %v2610_v19 = vpop.eup %2609  ;;  %v1460_v31 = vmul.f32 0.7978846, %v1444_v27  ;;  %v1397_v32 = vmul.f32 %v3337_v29, %v3337_v29 }
 0x2ca   : > { %v1491_v36 = vadd.f32 1.0, %v2610_v19  ;;  %v1250_v19 = vadd.f32 %v3332_v14, %v3243_v16 }
 0x2cb   : > { %2611 = vtanh.f32 %v1460_v31  ;;  %v1413_v24 = vmul.f32 %v1397_v32, %v3337_v29 }
 0x2cc   : > { %v1507_v39 = vmul.f32 0.5, %v1491_v36  ;;  %v1342_v42 = vpop.f32.mrf.mxu2 }
 0x2cd   : > { %v1429_v41 = vmul.f32 0.044715, %v1413_v24  ;;  %v1343_v23 = vadd.f32 %v1342_v42, %v1294_v37  ;;  %v1299_v37 = vadd.f32 %v3334_v18, %v1250_v19 }
 0x2ce   : > { %v1523_v47 = vmul.f32 %v1507_v39, %v1379_v61 }
 0x2cf   : > { %v1445_v49 = vadd.f32 %v1429_v41, %v3337_v29  ;;  %v3353_v51 = vadd.f32 %v3325_v43, %v1343_v23 }
 0x2d0   : > { %v1557_v53 = vadd.f32 %v1541_v45, %v1523_v47  ;;  %v1543_v45 = vld [vmem:[#allocation4 + $0xe8] sm:$0xff] }
 0x2d1   : > { %v2612_v55 = vpop.eup %2611  ;;  %v1461_v57 = vmul.f32 0.7978846, %v1445_v49  ;;  %v1398_v58 = vmul.f32 %v3353_v51, %v3353_v51  ;;  %v3399_v49 = vpop.f32.mrf.mxu0 }
 0x2d2   : > { %v1576_v52 = vsel %vm3347_vm0, %v1557_v53, %v1523_v47  ;;  %v1492_v62 = vadd.f32 1.0, %v2612_v55 }
 0x2d3   : > { %v1610_v2 = vadd.f32 %v1594_v54, %v1576_v52  ;;  %2613 = vtanh.f32 %v1461_v57  ;;  %v1414_v3 = vmul.f32 %v1398_v58, %v3353_v51  ;;  %v1596_v57 = vld [vmem:[#allocation4 + $0x50] sm:$0xff] }
 0x2d4   : > { %v1508_v4 = vmul.f32 0.5, %v1492_v62  ;;  %v1345_v11 = vpop.f32.mrf.mxu2  ;;  %v3409_v62 = vpop.f32.mrf.mxu1 }
 0x2d5   : > { %v3369_v5 = vsel %vm3360_vm1, %v1610_v2, %v1576_v52  ;;  %v1430_v9 = vmul.f32 0.044715, %v1414_v3  ;;  %v1346_v12 = vadd.f32 %v1345_v11, %v1297_v1  ;;  %v1253_v52 = vadd.f32 %v3342_v38, %v3248_v21 }
 0x2d6   : > { %v1647_v15 = vmul.f32 %v3369_v5, %v3369_v5  ;;  %v1524_v8 = vmul.f32 %v1508_v4, %v1380_v10 }
 0x2d7   : > { %v1446_v17 = vadd.f32 %v1430_v9, %v3353_v51  ;;  %v3380_v13 = vadd.f32 %v3325_v43, %v1346_v12  ;;  %v1302_v11 = vadd.f32 %v3345_v44, %v1253_v52  ;;  %v1545_v52 = vld [vmem:[#allocation4 + $0x8] sm:$0xff] }
 0x2d8   : > { %v1663_v20 = vmul.f32 %v1647_v15, %v3369_v5  ;;  %v1558_v22 = vadd.f32 %v1542_v7, %v1524_v8 }
 0x2d9   : > { %v2614_v27 = vpop.eup %2613  ;;  %v1462_v30 = vmul.f32 0.7978846, %v1446_v17  ;;  %v1399_v10 = vmul.f32 %v3380_v13, %v3380_v13 }
 0x2da   : > { %v1679_v31 = vmul.f32 0.044715, %v1663_v20  ;;  %v1577_v32 = vsel %vm3347_vm0, %v1558_v22, %v1524_v8  ;;  %v1493_v36 = vadd.f32 1.0, %v2614_v27  ;;  %v1544_v8 = vld [vmem:[#allocation4 + $0x78] sm:$0xff]  ;;  %v1255_v22 = vadd.f32 %v3365_v60, %v3252_v28  ;;  %v1597_v28 = vld [vmem:[#allocation4 + $0xa0] sm:$0xff] }
 0x2db   : > { %v1611_v24 = vadd.f32 %v1595_v26, %v1577_v32  ;;  %2615 = vtanh.f32 %v1462_v30  ;;  %v1415_v39 = vmul.f32 %v1399_v10, %v3380_v13  ;;  %v1792_v10 = vstv %s3418_s8 }
 0x2dc   : > { %v1695_v40 = vadd.f32 %v1679_v31, %v3369_v5  ;;  %v1509_v42 = vmul.f32 0.5, %v1493_v36  ;;  %v1347_v16 = vpop.f32.mrf.mxu2  ;;  %vm3445_vm2 = vcmp.eq.s32.totalorder %v1792_v10, 1 }
 0x2dd   : > { %v3394_v14 = vsel %vm3360_vm1, %v1611_v24, %v1577_v32  ;;  %v1431_v41 = vmul.f32 0.044715, %v1415_v39  ;;  %v1348_v23 = vadd.f32 %v1347_v16, %v1299_v37  ;;  %v1304_v24 = vadd.f32 %v3373_v63, %v1255_v22  ;;  %v3441_v39 = vpop.f32.mrf.mxu0 }
 0x2de   : > { %v1711_v47 = vmul.f32 0.7978846, %v1695_v40  ;;  %v1648_v25 = vmul.f32 %v3394_v14, %v3394_v14  ;;  %v1525_v18 = vmul.f32 %v1509_v42, %v3337_v29 }
 0x2df   : > { %v1447_v53 = vadd.f32 %v1431_v41, %v3380_v13  ;;  %v3404_v54 = vadd.f32 %v3325_v43, %v1348_v23 }
 0x2e0   : > { %2617 = vtanh.f32 %v1711_v47  ;;  %v1664_v55 = vmul.f32 %v1648_v25, %v3394_v14  ;;  %v1559_v34 = vadd.f32 %v1543_v45, %v1525_v18  ;;  %v3451_v47 = vpop.f32.mrf.mxu1 }
 0x2e1   : > { %v2616_v58 = vpop.eup %2615  ;;  %v1463_v29 = vmul.f32 0.7978846, %v1447_v53  ;;  %v1400_v1 = vmul.f32 %v3404_v54, %v3404_v54 }
 0x2e2   : > { %v1680_v2 = vmul.f32 0.044715, %v1664_v55  ;;  %v1578_v3 = vsel %vm3347_vm0, %v1559_v34, %v1525_v18  ;;  %v1494_v4 = vadd.f32 1.0, %v2616_v58 }
 0x2e3   : > { %v1612_v7 = vadd.f32 %v1596_v57, %v1578_v3  ;;  %2619 = vtanh.f32 %v1463_v29  ;;  %v1416_v21 = vmul.f32 %v1400_v1, %v3404_v54 }
 0x2e4   : > { %v1696_v38 = vadd.f32 %v1680_v2, %v3394_v14  ;;  %v1510_v9 = vmul.f32 0.5, %v1494_v4  ;;  %v1350_v12 = vpop.f32.mrf.mxu2 }
 0x2e5   : > { %v3424_v15 = vsel %vm3360_vm1, %v1612_v7, %v1578_v3  ;;  %v1432_v17 = vmul.f32 0.044715, %v1416_v21  ;;  %v1351_v44 = vadd.f32 %v1350_v12, %v1302_v11 }
 0x2e6   : > { %v2618_v20 = vpop.eup %2617  ;;  %v1712_v26 = vmul.f32 0.7978846, %v1696_v38  ;;  %v1649_v27 = vmul.f32 %v3424_v15, %v3424_v15  ;;  %v1526_v19 = vmul.f32 %v1510_v9, %v3353_v51  ;;  %v1258_v38 = vadd.f32 %v3399_v49, %v3255_v35 }
 0x2e7   : > { %v1743_v30 = vadd.f32 1.0, %v2618_v20  ;;  %v1448_v31 = vadd.f32 %v1432_v17, %v3404_v54  ;;  %v3437_v32 = vadd.f32 %v3325_v43, %v1351_v44 }
 0x2e8   : > { %2621 = vtanh.f32 %v1712_v26  ;;  %v1665_v36 = vmul.f32 %v1649_v27, %v3424_v15  ;;  %v1560_v37 = vadd.f32 %v1544_v8, %v1526_v19  ;;  %v1598_v8 = vld [vmem:[#allocation4 + $0xd8] sm:$0xff]  ;;  %v1307_v22 = vadd.f32 %v3409_v62, %v1258_v38 }
 0x2e9   : > { %v2620_v60 = vpop.eup %2619  ;;  %v1759_v51 = vmul.f32 0.5, %v1743_v30  ;;  %v1464_v40 = vmul.f32 0.7978846, %v1448_v31  ;;  %v1401_v42 = vmul.f32 %v3437_v32, %v3437_v32  ;;  %v1262_v30 = vpop.f32.mrf.mxu0 }
 0x2ea   : > { %v1681_v45 = vmul.f32 0.044715, %v1665_v36  ;;  %v1579_v41 = vsel %vm3347_vm0, %v1560_v37, %v1526_v19  ;;  %v1495_v23 = vadd.f32 1.0, %v2620_v60 }
 0x2eb   : > { %v1775_v63 = vmul.f32 %v1759_v51, %v3369_v5  ;;  %v1613_v25 = vadd.f32 %v1597_v28, %v1579_v41  ;;  %2623 = vtanh.f32 %v1464_v40  ;;  %v1417_v18 = vmul.f32 %v1401_v42, %v3437_v32  ;;  %v1311_v28 = vpop.f32.mrf.mxu1 }
 0x2ec   : > { %v1697_v53 = vadd.f32 %v1681_v45, %v3424_v15  ;;  %v1511_v55 = vmul.f32 0.5, %v1495_v23  ;;  %v1352_v34 = vpop.f32.mrf.mxu2 }
 0x2ed   : > { %v3459_v57 = vsel %vm3445_vm2, %v1775_v63, %v3369_v5  ;;  %v3463_v58 = vsel %vm3360_vm1, %v1613_v25, %v1579_v41  ;;  %v1433_v29 = vmul.f32 0.044715, %v1417_v18  ;;  %v1353_v1 = vadd.f32 %v1352_v34, %v1304_v24  ;;  %v1546_v24 = vld [vmem:[#allocation4 + $0x90] sm:$0xff] }
 0x2ee   : > { %v2622_v2 = vpop.eup %2621  ;;  %1810 = vst [vmem:[#allocation2 + $0x30] sm:$0xff] %v3459_v57  ;;  %v1713_v3 = vmul.f32 0.7978846, %v1697_v53  ;;  %v1650_v4 = vmul.f32 %v3463_v58, %v3463_v58  ;;  %v1527_v11 = vmul.f32 %v1511_v55, %v3380_v13  ;;  %v1260_v18 = vadd.f32 %v3441_v39, %v3257_v33  ;;  %v1599_v34 = vld [vmem:[#allocation4 + $0x30] sm:$0xff] }
 0x2ef   : > { %v1744_v7 = vadd.f32 1.0, %v2622_v2  ;;  %v1449_v5 = vadd.f32 %v1433_v29, %v3437_v32  ;;  %v3471_v21 = vadd.f32 %v3325_v43, %v1353_v1 }
 0x2f0   : > { %2625 = vtanh.f32 %v1713_v3  ;;  %v1666_v9 = vmul.f32 %v1650_v4, %v3463_v58  ;;  %v1561_v12 = vadd.f32 %v1545_v52, %v1527_v11  ;;  %v1309_v2 = vadd.f32 %v3451_v47, %v1260_v18 }
 0x2f1   : > { %v2624_v17 = vpop.eup %2623  ;;  %v1760_v44 = vmul.f32 0.5, %v1744_v7  ;;  %v1465_v20 = vmul.f32 0.7978846, %v1449_v5  ;;  %v1402_v13 = vmul.f32 %v3471_v21, %v3471_v21 }
 0x2f2   : > { %v1682_v26 = vmul.f32 0.044715, %v1666_v9  ;;  %v1580_v27 = vsel %vm3347_vm0, %v1561_v12, %v1527_v11  ;;  %v1496_v19 = vadd.f32 1.0, %v2624_v17  ;;  %v1264_v12 = vpop.f32.mrf.mxu0  ;;  %v1547_v17 = vld [vmem:[#allocation4 + $0x58] sm:$0xff] }
 0x2f3   : > { %v1776_v35 = vmul.f32 %v1760_v44, %v3394_v14  ;;  %v1614_v49 = vadd.f32 %v1598_v8, %v1580_v27  ;;  %2627 = vtanh.f32 %v1465_v20  ;;  %v1418_v10 = vmul.f32 %v1402_v13, %v3471_v21 }
 0x2f4   : > { %v1698_v31 = vadd.f32 %v1682_v26, %v3463_v58  ;;  %v1512_v36 = vmul.f32 0.5, %v1496_v19  ;;  %v1355_v37 = vpop.f32.mrf.mxu2  ;;  %v1313_v19 = vpop.f32.mrf.mxu1 }
 0x2f5   : > { %v3487_v62 = vsel %vm3445_vm2, %v1776_v35, %v3394_v14  ;;  %v3491_v60 = vsel %vm3360_vm1, %v1614_v49, %v1580_v27  ;;  %v1434_v51 = vmul.f32 0.044715, %v1418_v10  ;;  %v1356_v40 = vadd.f32 %v1355_v37, %v1307_v22  ;;  %v1600_v37 = vld [vmem:[#allocation4 + $0x20] sm:$0xff] }
 0x2f6   : > { %v2626_v42 = vpop.eup %2625  ;;  %1811 = vst [vmem:[#allocation2] sm:$0xff] %v3487_v62  ;;  %v1714_v45 = vmul.f32 0.7978846, %v1698_v31  ;;  %v1651_v41 = vmul.f32 %v3491_v60, %v3491_v60  ;;  %v1528_v23 = vmul.f32 %v1512_v36, %v3404_v54  ;;  %v1263_v10 = vadd.f32 %v1262_v30, %v3260_v46 }
 0x2f7   : > { %v1745_v63 = vadd.f32 1.0, %v2626_v42  ;;  %v1450_v14 = vadd.f32 %v1434_v51, %v3471_v21  ;;  %v3499_v25 = vadd.f32 %v3325_v43, %v1356_v40 }
 0x2f8   : > { %2629 = vtanh.f32 %v1714_v45  ;;  %v1667_v53 = vmul.f32 %v1651_v41, %v3491_v60  ;;  %v1562_v55 = vadd.f32 %v1546_v24, %v1528_v23  ;;  %v1312_v42 = vadd.f32 %v1311_v28, %v1263_v10 }
 0x2f9   : > { %v2628_v52 = vpop.eup %2627  ;;  %v1761_v29 = vmul.f32 0.5, %v1745_v63  ;;  %v1466_v1 = vmul.f32 0.7978846, %v1450_v14  ;;  %v1403_v54 = vmul.f32 %v3499_v25, %v3499_v25 }
 0x2fa   : > { %v1683_v3 = vmul.f32 0.044715, %v1667_v53  ;;  %v1581_v4 = vsel %vm3347_vm0, %v1562_v55, %v1528_v23  ;;  %v1497_v11 = vadd.f32 1.0, %v2628_v52 }
 0x2fb   : > { %v1777_v33 = vmul.f32 %v1761_v29, %v3424_v15  ;;  %v1615_v39 = vadd.f32 %v1599_v34, %v1581_v4  ;;  %2631 = vtanh.f32 %v1466_v1  ;;  %v1419_v7 = vmul.f32 %v1403_v54, %v3499_v25  ;;  %v1548_v34 = vld [vmem:[#allocation4 + $0xa8] sm:$0xff] }
 0x2fc   : > { %v1699_v5 = vadd.f32 %v1683_v3, %v3491_v60  ;;  %v1513_v38 = vmul.f32 0.5, %v1497_v11  ;;  %v1357_v9 = vpop.f32.mrf.mxu2 }
 0x2fd   : > { %v3515_v47 = vsel %vm3445_vm2, %v1777_v33, %v3424_v15  ;;  %v3519_v8 = vsel %vm3360_vm1, %v1615_v39, %v1581_v4  ;;  %v1435_v44 = vmul.f32 0.044715, %v1419_v7  ;;  %v1358_v20 = vadd.f32 %v1357_v9, %v1309_v2  ;;  %v1267_v4 = vpop.f32.mrf.mxu0 }
 0x2fe   : > { %v2630_v13 = vpop.eup %2629  ;;  %1812 = vst [vmem:[#allocation2 + $0x58] sm:$0xff] %v3515_v47  ;;  %v1715_v22 = vmul.f32 0.7978846, %v1699_v5  ;;  %v1652_v26 = vmul.f32 %v3519_v8, %v3519_v8  ;;  %v1529_v27 = vmul.f32 %v1513_v38, %v3437_v32  ;;  %v1265_v39 = vadd.f32 %v1264_v12, %v3262_v50  ;;  %v1601_v38 = vld [vmem:[#allocation4 + $0xf0] sm:$0xff] }
 0x2ff   : > { %v1746_v35 = vadd.f32 1.0, %v2630_v13  ;;  %v1451_v15 = vadd.f32 %v1435_v44, %v3499_v25  ;;  %v3527_v49 = vadd.f32 %v3325_v43, %v1358_v20 }
 0x300   : > { %2633 = vtanh.f32 %v1715_v22  ;;  %v1668_v31 = vmul.f32 %v1652_v26, %v3519_v8  ;;  %v1563_v36 = vadd.f32 %v1547_v17, %v1529_v27  ;;  %v1316_v17 = vpop.f32.mrf.mxu1  ;;  %v1314_v13 = vadd.f32 %v1313_v19, %v1265_v39 }
 0x301   : > { %v2632_v24 = vpop.eup %2631  ;;  %v1762_v51 = vmul.f32 0.5, %v1746_v35  ;;  %v1467_v40 = vmul.f32 0.7978846, %v1451_v15  ;;  %v1404_v32 = vmul.f32 %v3527_v49, %v3527_v49 }
 0x302   : > { %v1684_v45 = vmul.f32 0.044715, %v1668_v31  ;;  %v1582_v41 = vsel %vm3347_vm0, %v1563_v36, %v1529_v27  ;;  %v1498_v23 = vadd.f32 1.0, %v2632_v24 }
 0x303   : > { %v1778_v63 = vmul.f32 %v1762_v51, %v3463_v58  ;;  %v1616_v46 = vadd.f32 %v1600_v37, %v1582_v41  ;;  %2635 = vtanh.f32 %v1467_v40  ;;  %v1420_v30 = vmul.f32 %v1404_v32, %v3527_v49  ;;  %v1549_v37 = vld [vmem:[#allocation4 + $0xd0] sm:$0xff] }
 0x304   : > { %v1700_v14 = vadd.f32 %v1684_v45, %v3519_v8  ;;  %v1514_v18 = vmul.f32 0.5, %v1498_v23  ;;  %v1360_v53 = vpop.f32.mrf.mxu2 }
 0x305   : > { %v3541_v55 = vsel %vm3445_vm2, %v1778_v63, %v3463_v58  ;;  %v3545_v28 = vsel %vm3360_vm1, %v1616_v46, %v1582_v41  ;;  %v1436_v52 = vmul.f32 0.044715, %v1420_v30  ;;  %v1361_v29 = vadd.f32 %v1360_v53, %v1312_v42  ;;  %v1269_v53 = vpop.f32.mrf.mxu0 }
 0x306   : > { %v2634_v1 = vpop.eup %2633  ;;  %1813 = vst [vmem:[#allocation2 + $0x18] sm:$0xff] %v3541_v55  ;;  %v1716_v54 = vmul.f32 0.7978846, %v1700_v14  ;;  %v1653_v2 = vmul.f32 %v3545_v28, %v3545_v28  ;;  %v1530_v3 = vmul.f32 %v1514_v18, %v3471_v21  ;;  %v1268_v63 = vadd.f32 %v1267_v4, %v3265_v56  ;;  %v1602_v14 = vld [vmem:[#allocation4 + $0x88] sm:$0xff] }
 0x307   : > { %v1747_v11 = vadd.f32 1.0, %v2634_v1  ;;  %v1452_v58 = vadd.f32 %v1436_v52, %v3527_v49  ;;  %v3553_v33 = vadd.f32 %v3325_v43, %v1361_v29 }
 0x308   : > { %2637 = vtanh.f32 %v1716_v54  ;;  %v1669_v7 = vmul.f32 %v1653_v2, %v3545_v28  ;;  %v1564_v5 = vadd.f32 %v1548_v34, %v1530_v3  ;;  %v1317_v29 = vadd.f32 %v1316_v17, %v1268_v63 }
 0x309   : > { %v2636_v9 = vpop.eup %2635  ;;  %v1763_v44 = vmul.f32 0.5, %v1747_v11  ;;  %v1468_v20 = vmul.f32 0.7978846, %v1452_v58  ;;  %v1405_v21 = vmul.f32 %v3553_v33, %v3553_v33 }
 0x30a   : > { %v1685_v22 = vmul.f32 0.044715, %v1669_v7  ;;  %v1583_v26 = vsel %vm3347_vm0, %v1564_v5, %v1530_v3  ;;  %v1499_v27 = vadd.f32 1.0, %v2636_v9  ;;  %v1318_v3 = vpop.f32.mrf.mxu1  ;;  %v1550_v9 = vld [vmem:[#allocation4 + $0xb0] sm:$0xff] }
 0x30b   : > { %v1779_v50 = vmul.f32 %v1763_v44, %v3491_v60  ;;  %v1617_v12 = vadd.f32 %v1601_v38, %v1583_v26  ;;  %2639 = vtanh.f32 %v1468_v20  ;;  %v1421_v35 = vmul.f32 %v1405_v21, %v3553_v33 }
 0x30c   : > { %v1701_v15 = vadd.f32 %v1685_v22, %v3545_v28  ;;  %v1515_v10 = vmul.f32 0.5, %v1499_v27  ;;  %v1362_v31 = vpop.f32.mrf.mxu2 }
 0x30d   : > { %v3567_v36 = vsel %vm3445_vm2, %v1779_v50, %v3491_v60  ;;  %v3571_v19 = vsel %vm3360_vm1, %v1617_v12, %v1583_v26  ;;  %v1437_v24 = vmul.f32 0.044715, %v1421_v35  ;;  %v1363_v51 = vadd.f32 %v1362_v31, %v1314_v13 }
 0x30e   : > { %v2638_v40 = vpop.eup %2637  ;;  %1814 = vst [vmem:[#allocation2 + $0x50] sm:$0xff] %v3567_v36  ;;  %v1717_v32 = vmul.f32 0.7978846, %v1701_v15  ;;  %v1654_v42 = vmul.f32 %v3571_v19, %v3571_v19  ;;  %v1531_v45 = vmul.f32 %v1515_v10, %v3499_v25  ;;  %v1270_v50 = vadd.f32 %v1269_v53, %v3267_v59  ;;  %v1603_v15 = vld [vmem:[#allocation4 + $0x48] sm:$0xff]  ;;  %v1551_v53 = vld [vmem:[#allocation4 + $0x38] sm:$0xff] }
 0x30f   : > { %v1748_v41 = vadd.f32 1.0, %v2638_v40  ;;  %v1453_v60 = vadd.f32 %v1437_v24, %v3553_v33  ;;  %v3579_v23 = vadd.f32 %v3325_v43, %v1363_v51 }
 0x310   : > { %2641 = vtanh.f32 %v1717_v32  ;;  %v1670_v46 = vmul.f32 %v1654_v42, %v3571_v19  ;;  %v1565_v30 = vadd.f32 %v1549_v37, %v1531_v45  ;;  %v1272_v42 = vpop.f32.mrf.mxu0 }
 0x311   : > { %v2640_v18 = vpop.eup %2639  ;;  %v1764_v34 = vmul.f32 0.5, %v1748_v41  ;;  %v1469_v52 = vmul.f32 0.7978846, %v1453_v60  ;;  %v1406_v25 = vmul.f32 %v3579_v23, %v3579_v23 }
 0x312   : > { %v1686_v1 = vmul.f32 0.044715, %v1670_v46  ;;  %v1584_v54 = vsel %vm3347_vm0, %v1565_v30, %v1531_v45  ;;  %v1500_v2 = vadd.f32 1.0, %v2640_v18  ;;  %v1321_v30 = vpop.f32.mrf.mxu1 }
 0x313   : > { %v1780_v56 = vmul.f32 %v1764_v34, %v3519_v8  ;;  %v1618_v4 = vadd.f32 %v1602_v14, %v1584_v54  ;;  %2643 = vtanh.f32 %v1469_v52  ;;  %v1422_v11 = vmul.f32 %v1406_v25, %v3579_v23 }
 0x314   : > { %v1702_v58 = vadd.f32 %v1686_v1, %v3571_v19  ;;  %v1516_v39 = vmul.f32 0.5, %v1500_v2  ;;  %v1365_v7 = vpop.f32.mrf.mxu2 }
 0x315   : > { %v3593_v5 = vsel %vm3445_vm2, %v1780_v56, %v3519_v8  ;;  %v3597_v38 = vsel %vm3360_vm1, %v1618_v4, %v1584_v54  ;;  %v1438_v17 = vmul.f32 0.044715, %v1422_v11  ;;  %v1366_v44 = vadd.f32 %v1365_v7, %v1317_v29 }
 0x316   : > { %v2642_v20 = vpop.eup %2641  ;;  %1815 = vst [vmem:[#allocation2 + $0x68] sm:$0xff] %v3593_v5  ;;  %v1718_v21 = vmul.f32 0.7978846, %v1702_v58  ;;  %v1655_v13 = vmul.f32 %v3597_v38, %v3597_v38  ;;  %v1532_v22 = vmul.f32 %v1516_v39, %v3527_v49  ;;  %v1319_v49 = vadd.f32 %v1318_v3, %v1270_v50  ;;  %v1604_v58 = vld [vmem:[#allocation4 + $0xf8] sm:$0xff] }
 0x317   : > { %v1749_v26 = vadd.f32 1.0, %v2642_v20  ;;  %v1454_v8 = vadd.f32 %v1438_v17, %v3579_v23  ;;  %v3605_v27 = vadd.f32 %v3325_v43, %v1366_v44  ;;  %v1273_v56 = vadd.f32 %v1272_v42, %v3270_v0 }
 0x318   : > { %2645 = vtanh.f32 %v1718_v21  ;;  %v1671_v12 = vmul.f32 %v1655_v13, %v3597_v38  ;;  %v1566_v35 = vadd.f32 %v1550_v9, %v1532_v22 }
 0x319   : > { %v2644_v10 = vpop.eup %2643  ;;  %v1765_v31 = vmul.f32 0.5, %v1749_v26  ;;  %v1470_v37 = vmul.f32 0.7978846, %v1454_v8  ;;  %v1407_v24 = vmul.f32 %v3605_v27, %v3605_v27 }
 0x31a   : > { %v1687_v51 = vmul.f32 0.044715, %v1671_v12  ;;  %v1585_v40 = vsel %vm3347_vm0, %v1566_v35, %v1532_v22  ;;  %v1501_v32 = vadd.f32 1.0, %v2644_v10  ;;  %v1274_v12 = vpop.f32.mrf.mxu0  ;;  %v1552_v10 = vld [vmem:[#allocation4 + $0x40] sm:$0xff] }
 0x31b   : > { %v1781_v59 = vmul.f32 %v1765_v31, %v3545_v28  ;;  %v1619_v45 = vadd.f32 %v1603_v15, %v1585_v40  ;;  %2647 = vtanh.f32 %v1470_v37  ;;  %v1423_v41 = vmul.f32 %v1407_v24, %v3605_v27 }
 0x31c   : > { %v1703_v60 = vadd.f32 %v1687_v51, %v3597_v38  ;;  %v1517_v63 = vmul.f32 0.5, %v1501_v32  ;;  %v1367_v46 = vpop.f32.mrf.mxu2  ;;  %v1323_v32 = vpop.f32.mrf.mxu1 }
 0x31d   : > { %v3619_v14 = vsel %vm3445_vm2, %v1781_v59, %v3545_v28  ;;  %v3623_v18 = vsel %vm3360_vm1, %v1619_v45, %v1585_v40  ;;  %v1439_v34 = vmul.f32 0.044715, %v1423_v41  ;;  %v1368_v52 = vadd.f32 %v1367_v46, %v1319_v49 }
 0x31e   : > { %v2646_v25 = vpop.eup %2645  ;;  %1816 = vst [vmem:[#allocation2 + $0x8] sm:$0xff] %v3619_v14  ;;  %v1719_v29 = vmul.f32 0.7978846, %v1703_v60  ;;  %v1656_v1 = vmul.f32 %v3623_v18, %v3623_v18  ;;  %v1533_v54 = vmul.f32 %v1517_v63, %v3553_v33  ;;  %v1322_v33 = vadd.f32 %v1321_v30, %v1273_v56  ;;  %v1605_v63 = vld [vmem:[#allocation4 + $0xc0] sm:$0xff] }
 0x31f   : > { %v1750_v2 = vadd.f32 1.0, %v2646_v25  ;;  %v1455_v28 = vadd.f32 %v1439_v34, %v3605_v27  ;;  %v3631_v3 = vadd.f32 %v3325_v43, %v1368_v52  ;;  %v1275_v45 = vadd.f32 %v1274_v12, %v3272_v6 }
 0x320   : > { %2649 = vtanh.f32 %v1719_v29  ;;  %v1672_v4 = vmul.f32 %v1656_v1, %v3623_v18  ;;  %v1567_v11 = vadd.f32 %v1551_v53, %v1533_v54 }
 0x321   : > { %v2648_v39 = vpop.eup %2647  ;;  %v1766_v7 = vmul.f32 0.5, %v1750_v2  ;;  %v1471_v9 = vmul.f32 0.7978846, %v1455_v28  ;;  %v1408_v17 = vmul.f32 %v3631_v3, %v3631_v3  ;;  %v1324_v34 = vadd.f32 %v1323_v32, %v1275_v45 }
 0x322   : > { %v1688_v44 = vmul.f32 0.044715, %v1672_v4  ;;  %v1586_v20 = vsel %vm3347_vm0, %v1567_v11, %v1533_v54  ;;  %v1502_v21 = vadd.f32 1.0, %v2648_v39 }
 0x323   : > { %v1782_v13 = vmul.f32 %v1766_v7, %v3571_v19  ;;  %v1620_v0 = vadd.f32 %v1604_v58, %v1586_v20  ;;  %2651 = vtanh.f32 %v1471_v9  ;;  %v1424_v22 = vmul.f32 %v1408_v17, %v3631_v3  ;;  %v1553_v58 = vld [vmem:[#allocation4 + $0xe0] sm:$0xff] }
 0x324   : > { %v1704_v26 = vadd.f32 %v1688_v44, %v3623_v18  ;;  %v1518_v8 = vmul.f32 0.5, %v1502_v21  ;;  %v1370_v50 = vpop.f32.mrf.mxu2 }
 0x325   : > { %v3645_v35 = vsel %vm3445_vm2, %v1782_v13, %v3571_v19  ;;  %v3649_v15 = vsel %vm3360_vm1, %v1620_v0, %v1586_v20  ;;  %v1440_v31 = vmul.f32 0.044715, %v1424_v22  ;;  %v1371_v37 = vadd.f32 %v1370_v50, %v1322_v33  ;;  %v1606_v22 = vld [vmem:[#allocation4 + $0xb8] sm:$0xff] }
 0x326   : > { %v2650_v24 = vpop.eup %2649  ;;  %1817 = vst [vmem:[#allocation2 + $0x48] sm:$0xff] %v3645_v35  ;;  %v1720_v49 = vmul.f32 0.7978846, %v1704_v26  ;;  %v1657_v51 = vmul.f32 %v3649_v15, %v3649_v15  ;;  %v1534_v40 = vmul.f32 %v1518_v8, %v3579_v23 }
 0x327   : > { %v1751_v42 = vadd.f32 1.0, %v2650_v24  ;;  %v1456_v19 = vadd.f32 %v1440_v31, %v3631_v3  ;;  %v3657_v59 = vadd.f32 %v3325_v43, %v1371_v37 }
 0x328   : > { %2653 = vtanh.f32 %v1720_v49  ;;  %v1673_v41 = vmul.f32 %v1657_v51, %v3649_v15  ;;  %v1568_v60 = vadd.f32 %v1552_v10, %v1534_v40 }
 0x329   : > { %v2652_v46 = vpop.eup %2651  ;;  %v1767_v30 = vmul.f32 0.5, %v1751_v42  ;;  %v1472_v53 = vmul.f32 0.7978846, %v1456_v19  ;;  %v1409_v23 = vmul.f32 %v3657_v59, %v3657_v59  ;;  %v1554_v42 = vld [vmem:[#allocation4 + $0x60] sm:$0xff] }
 0x32a   : > { %v1689_v52 = vmul.f32 0.044715, %v1673_v41  ;;  %v1587_v25 = vsel %vm3347_vm0, %v1568_v60, %v1534_v40  ;;  %v1503_v29 = vadd.f32 1.0, %v2652_v46 }
 0x32b   : > { %v1783_v1 = vmul.f32 %v1767_v30, %v3597_v38  ;;  %v1621_v6 = vadd.f32 %v1605_v63, %v1587_v25  ;;  %2655 = vtanh.f32 %v1472_v53  ;;  %v1425_v54 = vmul.f32 %v1409_v23, %v3657_v59  ;;  %v1607_v23 = vld [vmem:[#allocation4] sm:$0xff] }
 0x32c   : > { %v1705_v2 = vadd.f32 %v1689_v52, %v3649_v15  ;;  %v1519_v28 = vmul.f32 0.5, %v1503_v29  ;;  %v1372_v56 = vpop.f32.mrf.mxu2 }
 0x32d   : > { %v3671_v4 = vsel %vm3445_vm2, %v1783_v1, %v3597_v38  ;;  %v3675_v11 = vsel %vm3360_vm1, %v1621_v6, %v1587_v25  ;;  %v1441_v39 = vmul.f32 0.044715, %v1425_v54  ;;  %v1373_v7 = vadd.f32 %v1372_v56, %v1324_v34 }
 0x32e   : > { %v2654_v9 = vpop.eup %2653  ;;  %1818 = vst [vmem:[#allocation2 + $0x40] sm:$0xff] %v3671_v4  ;;  %v1721_v17 = vmul.f32 0.7978846, %v1705_v2  ;;  %v1658_v33 = vmul.f32 %v3675_v11, %v3675_v11  ;;  %v1535_v44 = vmul.f32 %v1519_v28, %v3605_v27 }
 0x32f   : > { %v1752_v20 = vadd.f32 1.0, %v2654_v9  ;;  %v1457_v38 = vadd.f32 %v1441_v39, %v3657_v59  ;;  %v3683_v21 = vadd.f32 %v3325_v43, %v1373_v7  ;;  %v1555_v39 = vld [vmem:[#allocation4 + $0x18] sm:$0xff] }
 0x330   : > { %2657 = vtanh.f32 %v1721_v17  ;;  %v1674_v13 = vmul.f32 %v1658_v33, %v3675_v11  ;;  %v1569_v0 = vadd.f32 %v1553_v58, %v1535_v44 }
 0x331   : > { %v2656_v26 = vpop.eup %2655  ;;  %v1768_v8 = vmul.f32 0.5, %v1752_v20  ;;  %v1473_v50 = vmul.f32 0.7978846, %v1457_v38  ;;  %v1410_v12 = vmul.f32 %v3683_v21, %v3683_v21 }
 0x332   : > { %v1690_v10 = vmul.f32 0.044715, %v1674_v13  ;;  %v1588_v27 = vsel %vm3347_vm0, %v1569_v0, %v1535_v44  ;;  %v1504_v31 = vadd.f32 1.0, %v2656_v26  ;;  %v1608_v13 = vld [vmem:[#allocation4 + $0x28] sm:$0xff] }
 0x333   : > { %v1784_v37 = vmul.f32 %v1768_v8, %v3623_v18  ;;  %v1622_v43 = vadd.f32 %v1606_v22, %v1588_v27  ;;  %2659 = vtanh.f32 %v1473_v50  ;;  %v1426_v24 = vmul.f32 %v1410_v12, %v3683_v21 }
 0x334   : > { %v1706_v49 = vadd.f32 %v1690_v10, %v3675_v11  ;;  %v1520_v51 = vmul.f32 0.5, %v1504_v31 }
 0x335   : > { %v3696_v40 = vsel %vm3445_vm2, %v1784_v37, %v3623_v18  ;;  %v3700_v32 = vsel %vm3360_vm1, %v1622_v43, %v1588_v27  ;;  %v1442_v19 = vmul.f32 0.044715, %v1426_v24  ;;  %v1556_v37 = vld [vmem:[#allocation4 + $0x68] sm:$0xff] }
 0x336   : > { %v2658_v45 = vpop.eup %2657  ;;  %1819 = vst [vmem:[#allocation2 + $0x20] sm:$0xff] %v3696_v40  ;;  %v1722_v41 = vmul.f32 0.7978846, %v1706_v49  ;;  %v1659_v60 = vmul.f32 %v3700_v32, %v3700_v32  ;;  %v1536_v63 = vmul.f32 %v1520_v51, %v3631_v3 }
 0x337   : > { %v1753_v46 = vadd.f32 1.0, %v2658_v45  ;;  %v1458_v30 = vadd.f32 %v1442_v19, %v3683_v21 }
 0x338   : > { %2661 = vtanh.f32 %v1722_v41  ;;  %v1675_v18 = vmul.f32 %v1659_v60, %v3700_v32  ;;  %v1570_v53 = vadd.f32 %v1554_v42, %v1536_v63  ;;  %v1609_v41 = vld [vmem:[#allocation4 + $0x98] sm:$0xff] }
 0x339   : > { %v2660_v34 = vpop.eup %2659  ;;  %v1769_v52 = vmul.f32 0.5, %v1753_v46  ;;  %v1474_v25 = vmul.f32 0.7978846, %v1458_v30 }
 0x33a   : > { %v1691_v29 = vmul.f32 0.044715, %v1675_v18  ;;  %v1589_v1 = vsel %vm3347_vm0, %v1570_v53, %v1536_v63  ;;  %v1505_v6 = vadd.f32 1.0, %v2660_v34 }
 0x33b   : > { %v1785_v54 = vmul.f32 %v1769_v52, %v3649_v15  ;;  %v1623_v2 = vadd.f32 %v1607_v23, %v1589_v1  ;;  %2663 = vtanh.f32 %v1474_v25 }
 0x33c   : > { %v1707_v3 = vadd.f32 %v1691_v29, %v3700_v32  ;;  %v1521_v28 = vmul.f32 0.5, %v1505_v6 }
 0x33d   : > { %v3715_v56 = vsel %vm3445_vm2, %v1785_v54, %v3649_v15  ;;  %v1642_v58 = vsel %vm3360_vm1, %v1623_v2, %v1589_v1 }
 0x33e   : > { %v2662_v7 = vpop.eup %2661  ;;  %1820 = vst [vmem:[#allocation2 + $0x10] sm:$0xff] %v3715_v56  ;;  %v1723_v9 = vmul.f32 0.7978846, %v1707_v3  ;;  %v1660_v17 = vmul.f32 %v1642_v58, %v1642_v58  ;;  %v1537_v33 = vmul.f32 %v1521_v28, %v3657_v59 }
 0x33f   : > { %v1754_v44 = vadd.f32 1.0, %v2662_v7 }
 0x340   : > { %2665 = vtanh.f32 %v1723_v9  ;;  %v1676_v20 = vmul.f32 %v1660_v17, %v1642_v58  ;;  %v1571_v38 = vadd.f32 %v1555_v39, %v1537_v33 }
 0x341   : > { %v2664_v0 = vpop.eup %2663  ;;  %v1770_v22 = vmul.f32 0.5, %v1754_v44 }
 0x342   : > { %v1692_v15 = vmul.f32 0.044715, %v1676_v20  ;;  %v1590_v26 = vsel %vm3347_vm0, %v1571_v38, %v1537_v33  ;;  %v1506_v8 = vadd.f32 1.0, %v2664_v0 }
 0x343   : > { %v1786_v50 = vmul.f32 %v1770_v22, %v3675_v11  ;;  %v1624_v12 = vadd.f32 %v1608_v13, %v1590_v26 }
 0x344   : > { %v1708_v10 = vadd.f32 %v1692_v15, %v1642_v58  ;;  %v1522_v27 = vmul.f32 0.5, %v1506_v8 }
 0x345   : > { %v3727_v59 = vsel %vm3445_vm2, %v1786_v50, %v3675_v11  ;;  %v1643_v31 = vsel %vm3360_vm1, %v1624_v12, %v1590_v26 }
 0x346   : > { %v2666_v43 = vpop.eup %2665  ;;  %1821 = vst [vmem:[#allocation2 + $0x38] sm:$0xff] %v3727_v59  ;;  %v1724_v24 = vmul.f32 0.7978846, %v1708_v10  ;;  %v1661_v49 = vmul.f32 %v1643_v31, %v1643_v31  ;;  %v1538_v51 = vmul.f32 %v1522_v27, %v3683_v21 }
 0x347   : > { %v1755_v42 = vadd.f32 1.0, %v2666_v43 }
 0x348   : > { %2667 = vtanh.f32 %v1724_v24  ;;  %v1677_v19 = vmul.f32 %v1661_v49, %v1643_v31  ;;  %v1572_v45 = vadd.f32 %v1556_v37, %v1538_v51 }
 0x349   : > { %v1771_v60 = vmul.f32 0.5, %v1755_v42 }
 0x34a   : > { %v1693_v63 = vmul.f32 0.044715, %v1677_v19  ;;  %v1591_v11 = vsel %vm3347_vm0, %v1572_v45, %v1538_v51 }
 0x34b   : > { %v1787_v46 = vmul.f32 %v1771_v60, %v3700_v32  ;;  %v1625_v30 = vadd.f32 %v1609_v41, %v1591_v11 }
 0x34c   : > { %v1709_v18 = vadd.f32 %v1693_v63, %v1643_v31 }
 0x34d   : > { %v3739_v53 = vsel %vm3445_vm2, %v1787_v46, %v3700_v32  ;;  %v1644_v21 = vsel %vm3360_vm1, %v1625_v30, %v1591_v11 }
 0x34e   : > { %v2668_v23 = vpop.eup %2667  ;;  %1822 = vst [vmem:[#allocation2 + $0x60] sm:$0xff] %v3739_v53  ;;  %v1725_v34 = vmul.f32 0.7978846, %v1709_v18  ;;  %v1662_v52 = vmul.f32 %v1644_v21, %v1644_v21 }
 0x34f   : > { %v1756_v25 = vadd.f32 1.0, %v2668_v23 }
 0x350   : > { %2669 = vtanh.f32 %v1725_v34  ;;  %v1678_v48 = vmul.f32 %v1662_v52, %v1644_v21 }
 0x351   : > { %v1772_v29 = vmul.f32 0.5, %v1756_v25 }
 0x352   : > { %v1694_v1 = vmul.f32 0.044715, %v1678_v48 }
 0x353   : > { %v1788_v6 = vmul.f32 %v1772_v29, %v1642_v58 }
 0x354   : > { %v1710_v54 = vadd.f32 %v1694_v1, %v1644_v21 }
 0x355   : > { %v3746_v2 = vsel %vm3445_vm2, %v1788_v6, %v1642_v58 }
 0x356   : > { %v2670_v32 = vpop.eup %2669  ;;  %1823 = vst [vmem:[#allocation2 + $0x70] sm:$0xff] %v3746_v2  ;;  %v1726_v61 = vmul.f32 0.7978846, %v1710_v54 }
 0x357   : > { %v1757_v3 = vadd.f32 1.0, %v2670_v32 }
 0x358   : > { %2671 = vtanh.f32 %v1726_v61 }
 0x359   : > { %v1773_v28 = vmul.f32 0.5, %v1757_v3 }
 0x35b   : > { %v1789_v39 = vmul.f32 %v1773_v28, %v1643_v31 }
 0x35d   : > { %v1808_v7 = vsel %vm3445_vm2, %v1789_v39, %v1643_v31 }
 0x35e   : > { %v2672_v9 = vpop.eup %2671  ;;  %1824 = vst [vmem:[#allocation2 + $0x78] sm:$0xff] %v1808_v7 }
 0x35f   : > { %v1758_v17 = vadd.f32 1.0, %v2672_v9 }
 0x361   : > { %v1774_v33 = vmul.f32 0.5, %v1758_v17 }
 0x362   : > { %1830 = sbr.rel (%p2295_p13) target bundleno = 887 (0x377), region = 56 }
 0x363   : > { %v1790_v44 = vmul.f32 %v1774_v33, %v1644_v21 }
 0x365   : > { %v1809_v58 = vsel %vm3445_vm2, %v1790_v44, %v1644_v21 }
 0x366   : > { %1825 = vst [vmem:[#allocation2 + $0x28] sm:$0xff] %v1809_v58 }
 0x367   : > { %1831 = vst [vmem:[#allocation4 + $0x80] sm:$0xff] %v3459_v57 }
 0x368   : > { %1832 = vst [vmem:[#allocation4 + $0xc8] sm:$0xff] %v3487_v62 }
 0x369   : > { %1833 = vst [vmem:[#allocation4 + $0xe8] sm:$0xff] %v3515_v47 }
 0x36a   : > { %1834 = vst [vmem:[#allocation4 + $0x78] sm:$0xff] %v3541_v55 }
 0x36b   : > { %1835 = vst [vmem:[#allocation4 + $0x8] sm:$0xff] %v3567_v36 }
 0x36c   : > { %1836 = vst [vmem:[#allocation4 + $0x90] sm:$0xff] %v3593_v5 }
 0x36d   : > { %1837 = vst [vmem:[#allocation4 + $0x58] sm:$0xff] %v3619_v14 }
 0x36e   : > { %1838 = vst [vmem:[#allocation4 + $0xa8] sm:$0xff] %v3645_v35 }
 0x36f   : > { %1839 = vst [vmem:[#allocation4 + $0xd0] sm:$0xff] %v3671_v4 }
 0x370   : > { %1840 = vst [vmem:[#allocation4 + $0xb0] sm:$0xff] %v3696_v40 }
 0x371   : > { %1841 = vst [vmem:[#allocation4 + $0x38] sm:$0xff] %v3715_v56 }
 0x372   : > { %1842 = vst [vmem:[#allocation4 + $0x40] sm:$0xff] %v3727_v59 }
 0x373   : > { %1843 = vst [vmem:[#allocation4 + $0xe0] sm:$0xff] %v3739_v53 }
 0x374   : > { %1844 = vst [vmem:[#allocation4 + $0x60] sm:$0xff] %v3746_v2 }
 0x375   : > { %1845 = vst [vmem:[#allocation4 + $0x18] sm:$0xff] %v1808_v7 }
 0x376   : > { %1846 = vst [vmem:[#allocation4 + $0x68] sm:$0xff] %v1809_v58 }
 0x377 PF: > { %p2296_p0 = scmp.ne.s32.totalorder %s3432_s25, 1 }
 0x379   : > { %1850 = sbr.rel (%p2296_p0) target bundleno = 910 (0x38e), region = 60 }
 0x37e   : > { %1851 = vst [vmem:[#allocation4 + $0x10] sm:$0xff] %v3459_v57 }
 0x37f   : > { %1852 = vst [vmem:[#allocation4 + $0x70] sm:$0xff] %v3487_v62 }
 0x380   : > { %1853 = vst [vmem:[#allocation4 + $0x50] sm:$0xff] %v3515_v47 }
 0x381   : > { %1854 = vst [vmem:[#allocation4 + $0xa0] sm:$0xff] %v3541_v55 }
 0x382   : > { %1855 = vst [vmem:[#allocation4 + $0xd8] sm:$0xff] %v3567_v36 }
 0x383   : > { %1856 = vst [vmem:[#allocation4 + $0x30] sm:$0xff] %v3593_v5 }
 0x384   : > { %1857 = vst [vmem:[#allocation4 + $0x20] sm:$0xff] %v3619_v14 }
 0x385   : > { %1858 = vst [vmem:[#allocation4 + $0xf0] sm:$0xff] %v3645_v35 }
 0x386   : > { %1859 = vst [vmem:[#allocation4 + $0x88] sm:$0xff] %v3671_v4 }
 0x387   : > { %1860 = vst [vmem:[#allocation4 + $0x48] sm:$0xff] %v3696_v40 }
 0x388   : > { %1861 = vst [vmem:[#allocation4 + $0xf8] sm:$0xff] %v3715_v56 }
 0x389   : > { %1862 = vst [vmem:[#allocation4 + $0xc0] sm:$0xff] %v3727_v59 }
 0x38a   : > { %1863 = vst [vmem:[#allocation4 + $0xb8] sm:$0xff] %v3739_v53 }
 0x38b   : > { %1864 = vst [vmem:[#allocation4] sm:$0xff] %v3746_v2 }
 0x38c   : > { %1865 = vst [vmem:[#allocation4 + $0x28] sm:$0xff] %v1808_v7 }
 0x38d   : > { %1866 = vst [vmem:[#allocation4 + $0x98] sm:$0xff] %v1809_v58 }
 0x38e PF: > { %p2297_p1 = scmp.ne.s32.totalorder %s2917_s2, 8 }
 0x390   : > { %1870 = sbr.rel (%p2297_p1) target bundleno = 933 (0x3a5), region = 64 }
 0x395   : > { %1871 = vst [vmem:[%s3864_s7] sm:$0xff] %v3459_v57 }
 0x396   : > { %1872 = vst [vmem:[%s3864_s7 + $0x8] sm:$0xff] %v3487_v62 }
 0x397   : > { %1873 = vst [vmem:[%s3864_s7 + $0x10] sm:$0xff] %v3515_v47 }
 0x398   : > { %1874 = vst [vmem:[%s3864_s7 + $0x18] sm:$0xff] %v3541_v55 }
 0x399   : > { %1875 = vst [vmem:[%s3864_s7 + $0x20] sm:$0xff] %v3567_v36 }
 0x39a   : > { %1876 = vst [vmem:[%s3864_s7 + $0x28] sm:$0xff] %v3593_v5 }
 0x39b   : > { %1877 = vst [vmem:[%s3864_s7 + $0x30] sm:$0xff] %v3619_v14 }
 0x39c   : > { %1878 = vst [vmem:[%s3864_s7 + $0x38] sm:$0xff] %v3645_v35 }
 0x39d   : > { %1879 = vst [vmem:[%s3864_s7 + $0x40] sm:$0xff] %v3671_v4 }
 0x39e   : > { %1880 = vst [vmem:[%s3864_s7 + $0x48] sm:$0xff] %v3696_v40 }
 0x39f   : > { %1881 = vst [vmem:[%s3864_s7 + $0x50] sm:$0xff] %v3715_v56 }
 0x3a0   : > { %1882 = vst [vmem:[%s3864_s7 + $0x58] sm:$0xff] %v3727_v59 }
 0x3a1   : > { %1883 = vst [vmem:[%s3864_s7 + $0x60] sm:$0xff] %v3739_v53 }
 0x3a2   : > { %1884 = vst [vmem:[%s3864_s7 + $0x68] sm:$0xff] %v3746_v2 }
 0x3a3   : > { %1885 = vst [vmem:[%s3864_s7 + $0x70] sm:$0xff] %v1808_v7 }
 0x3a4   : > { %1886 = vst [vmem:[%s3864_s7 + $0x78] sm:$0xff] %v1809_v58 }
 0x3a5 PF: > { %p38_p2 = scmp.ge.s32.totalorder %s2920_s15, 11   ;;  %s3876_s0 = smov %s2831_s1 }
 0x3a6   : > { %s3877_s1 = smov %s2835_s13  ;;  %s3878_s13 = smov %s2930_s18 }
 0x3a7   : > { %s3879_s14 = smov %s2920_s15  ;;  %40 = sbr.rel (!%p38_p2) target bundleno = 14 (0xe), region = 113 }
 0x3ac   :  { %1898 = vsyncpa [#allocation10], 1 }
 0x3ad   :  { %1900 = vsyncpa [#allocation10 + $0x1], 1 }
 0x3ae   :  { %1901 = vsyncpa [#allocation12], 1 }
 0x3af   :  { %1903 = vsyncpa [#allocation12 + $0x1], 1 }

</bundles_post_ra>
